<compile_context>
chip_gen: v6e
topology: v6e:2x2x1
jax: 0.10.0
libtpu: 0.0.40
codegen_flags: <defaults>
</compile_context>

<pallas_src>
import jax
import jax.numpy as jnp
from jax import lax
from jax.experimental import pallas as pl
from jax.experimental.pallas import tpu as pltpu


def encoder_vae_kernel(
    smiles_ref,   # (T, B, D_smiles)  time-major
    struct_ref,   # (B, D_struct)
    w_ih1_ref,    # (D_smiles, 4H)
    w_hh1_ref,    # (H, 4H)
    b1_ref,       # (1, 4H)   == b_ih_l0 + b_hh_l0
    w_ih2_ref,    # (H, 4H)
    w_hh2_ref,    # (H, 4H)
    b2_ref,       # (1, 4H)   == b_ih_l1 + b_hh_l1
    w_s_ref,      # (D_struct, H)
    b_s_ref,      # (1, H)
    w_mu_ref,     # (2H, L)
    b_mu_ref,     # (1, L)
    w_lv_ref,     # (2H, L)
    b_lv_ref,     # (1, L)
    mu_ref,       # out (B, L)
    logvar_ref,   # out (B, L)
    xp_ref,       # scratch VMEM (T*B, 4H) f32
):
    T, B, D_in = smiles_ref.shape
    H = w_hh1_ref.shape[0]

    # Precompute layer-1 input projections for every timestep in one large-M
    # matmul (keeps the MXU busy instead of T tiny (B, D) pushes).
    x_all = smiles_ref[...].reshape(T * B, D_in)
    xp_ref[...] = (
        jnp.dot(x_all, w_ih1_ref[...], preferred_element_type=jnp.float32)
        + b1_ref[...]
    )

    # Hoist resident weights out of the loop.
    w_hh1 = w_hh1_ref[...]
    w_ih2 = w_ih2_ref[...]
    w_hh2 = w_hh2_ref[...]
    b2 = b2_ref[...]

    def lstm_cell(gates, c_prev):
        # PyTorch gate order: i, f, g, o (static, 128-aligned lane slices).
        i = jax.nn.sigmoid(gates[:, 0 * H:1 * H])
        f = jax.nn.sigmoid(gates[:, 1 * H:2 * H])
        g = jnp.tanh(gates[:, 2 * H:3 * H])
        o = jax.nn.sigmoid(gates[:, 3 * H:4 * H])
        c = f * c_prev + i * g
        h = o * jnp.tanh(c)
        return h, c

    def step(t, carry):
        h1, c1, h2, c2 = carry
        row = pl.multiple_of(t * B, B)
        # Layer 0: precomputed input projection + recurrent projection.
        gates1 = xp_ref[pl.ds(row, B), :] + jnp.dot(
            h1, w_hh1, preferred_element_type=jnp.float32)
        h1, c1 = lstm_cell(gates1, c1)
        # Layer 1.
        gates2 = (
            jnp.dot(h1, w_ih2, preferred_element_type=jnp.float32) + b2
            + jnp.dot(h2, w_hh2, preferred_element_type=jnp.float32)
        )
        h2, c2 = lstm_cell(gates2, c2)
        return h1, c1, h2, c2

    zeros = jnp.zeros((B, H), jnp.float32)
    _, _, h2, _ = lax.fori_loop(0, T, step, (zeros, zeros, zeros, zeros))

    # struct branch: relu(fc_struct(struct_fp))
    struct_h = jnp.maximum(
        jnp.dot(struct_ref[...], w_s_ref[...],
                preferred_element_type=jnp.float32) + b_s_ref[...],
        0.0,
    )

    # combined = cat(h[-1], struct_h); heads use a single K = 2H dot each.
    combined = jnp.concatenate([h2, struct_h], axis=-1)
    mu = jnp.dot(combined, w_mu_ref[...],
                 preferred_element_type=jnp.float32) + b_mu_ref[...]
    lv = jnp.dot(combined, w_lv_ref[...],
                 preferred_element_type=jnp.float32) + b_lv_ref[...]
    mu_ref[...] = mu.astype(mu_ref.dtype)
    logvar_ref[...] = lv.astype(logvar_ref.dtype)


def encoder_vae_forward(smiles, struct_fp, params):
    """smiles: (B, T, D_smiles) batch-first (PyTorch convention).
    struct_fp: (B, D_struct). Returns (mu, logvar), each (B, latent_dim)."""
    B, T, _ = smiles.shape
    H = params["w_hh1"].shape[0]
    L = params["w_mu"].shape[1]

    smiles_tm = jnp.transpose(smiles, (1, 0, 2))  # time-major (T, B, D)

    operands = (
        smiles_tm, struct_fp,
        params["w_ih1"], params["w_hh1"], params["b1"],
        params["w_ih2"], params["w_hh2"], params["b2"],
        params["w_s"], params["b_s"],
        params["w_mu"], params["b_mu"],
        params["w_lv"], params["b_lv"],
    )
    vmem = pl.BlockSpec(memory_space=pltpu.MemorySpace.VMEM)

    mu, logvar = pl.pallas_call(
        encoder_vae_kernel,
        out_shape=(
            jax.ShapeDtypeStruct((B, L), smiles.dtype),
            jax.ShapeDtypeStruct((B, L), smiles.dtype),
        ),
        in_specs=[vmem] * len(operands),
        out_specs=(vmem, vmem),
        scratch_shapes=[pltpu.VMEM((T * B, 4 * H), jnp.float32)],
    )(*operands)
    return mu, logvar


def reference_forward(smiles, struct_fp, p):
    """Pure-JAX reference matching PyTorch LSTM / Linear semantics."""
    B, T, _ = smiles.shape
    H = p["w_hh1"].shape[0]

    def cell(x, h, c, w_ih, w_hh, b):
        gates = x @ w_ih + h @ w_hh + b
        i, f, g, o = jnp.split(gates, 4, axis=-1)
        c = jax.nn.sigmoid(f) * c + jax.nn.sigmoid(i) * jnp.tanh(g)
        h = jax.nn.sigmoid(o) * jnp.tanh(c)
        return h, c

    h1 = c1 = h2 = c2 = jnp.zeros((B, H), jnp.float32)
    for t in range(T):
        x_t = smiles[:, t, :]
        h1, c1 = cell(x_t, h1, c1, p["w_ih1"], p["w_hh1"], p["b1"])
        h2, c2 = cell(h1, h2, c2, p["w_ih2"], p["w_hh2"], p["b2"])
    struct_h = jnp.maximum(struct_fp @ p["w_s"] + p["b_s"], 0.0)
    combined = jnp.concatenate([h2, struct_h], axis=-1)
    return combined @ p["w_mu"] + p["b_mu"], combined @ p["w_lv"] + p["b_lv"]


if __name__ == "__main__":
    # Small, lane-friendly shapes consistent with the module.
    B, T = 8, 16
    D_SMILES, D_STRUCT = 128, 256
    HID, LATENT = 128, 128

    key = jax.random.PRNGKey(0)
    keys = jax.random.split(key, 16)

    def uni(k, shape, fan_in):
        bound = 1.0 / (fan_in ** 0.5)
        return jax.random.uniform(k, shape, jnp.float32, -bound, bound)

    smiles = jax.random.normal(keys[0], (B, T, D_SMILES), jnp.float32)
    struct_fp = jax.random.normal(keys[1], (B, D_STRUCT), jnp.float32)

    params = dict(
        # LSTM layer 0 (transposed to (in, 4H); gate order i, f, g, o).
        w_ih1=uni(keys[2], (D_SMILES, 4 * HID), HID),
        w_hh1=uni(keys[3], (HID, 4 * HID), HID),
        b1=uni(keys[4], (1, 4 * HID), HID),       # b_ih_l0 + b_hh_l0 folded
        # LSTM layer 1.
        w_ih2=uni(keys[5], (HID, 4 * HID), HID),
        w_hh2=uni(keys[6], (HID, 4 * HID), HID),
        b2=uni(keys[7], (1, 4 * HID), HID),       # b_ih_l1 + b_hh_l1 folded
        # fc_struct.
        w_s=uni(keys[8], (D_STRUCT, HID), D_STRUCT),
        b_s=uni(keys[9], (1, HID), D_STRUCT),
        # fc_mu / fc_logvar.
        w_mu=uni(keys[10], (2 * HID, LATENT), 2 * HID),
        b_mu=uni(keys[11], (1, LATENT), 2 * HID),
        w_lv=uni(keys[12], (2 * HID, LATENT), 2 * HID),
        b_lv=uni(keys[13], (1, LATENT), 2 * HID),
    )

    mu, logvar = encoder_vae_forward(smiles, struct_fp, params)
    mu, logvar = jax.block_until_ready((mu, logvar))

    mu_ref, lv_ref = reference_forward(smiles, struct_fp, params)
    assert mu.shape == (B, LATENT) and logvar.shape == (B, LATENT)
    assert jnp.allclose(mu, mu_ref, atol=1e-3, rtol=1e-3)
    assert jnp.allclose(logvar, lv_ref, atol=1e-3, rtol=1e-3)

    print("KERNEL_OK")
</pallas_src>

<mosaic_0001>
module attributes {stable_mosaic.version = 11 : i64} {
  func.func @encoder_vae_kernel(%arg0: memref<16x8x128xf32, #tpu.memory_space<vmem>>, %arg1: memref<8x256xf32, #tpu.memory_space<vmem>>, %arg2: memref<128x512xf32, #tpu.memory_space<vmem>>, %arg3: memref<128x512xf32, #tpu.memory_space<vmem>>, %arg4: memref<1x512xf32, #tpu.memory_space<vmem>>, %arg5: memref<128x512xf32, #tpu.memory_space<vmem>>, %arg6: memref<128x512xf32, #tpu.memory_space<vmem>>, %arg7: memref<1x512xf32, #tpu.memory_space<vmem>>, %arg8: memref<256x128xf32, #tpu.memory_space<vmem>>, %arg9: memref<1x128xf32, #tpu.memory_space<vmem>>, %arg10: memref<256x128xf32, #tpu.memory_space<vmem>>, %arg11: memref<1x128xf32, #tpu.memory_space<vmem>>, %arg12: memref<256x128xf32, #tpu.memory_space<vmem>>, %arg13: memref<1x128xf32, #tpu.memory_space<vmem>>, %arg14: memref<8x128xf32, #tpu.memory_space<vmem>>, %arg15: memref<8x128xf32, #tpu.memory_space<vmem>>, %arg16: memref<128x512xf32, #tpu.memory_space<vmem>>) attributes {dimension_semantics = [], scalar_prefetch = 0 : i64, scratch_operands = 1 : i64, tpu.core_type = #tpu.core_type<tc>} {
    %c0 = arith.constant 0 : index
    %c0_0 = arith.constant 0 : index
    %c0_1 = arith.constant 0 : index
    %0 = vector.load %arg0[%c0, %c0_0, %c0_1] : memref<16x8x128xf32, #tpu.memory_space<vmem>>, vector<16x8x128xf32>
    %1 = vector.shape_cast %0 : vector<16x8x128xf32> to vector<128x128xf32>
    %c0_2 = arith.constant 0 : index
    %c0_3 = arith.constant 0 : index
    %2 = vector.load %arg2[%c0_2, %c0_3] : memref<128x512xf32, #tpu.memory_space<vmem>>, vector<128x512xf32>
    %cst = arith.constant dense<0.000000e+00> : vector<128x512xf32>
    %3 = tpu.matmul %1, %2, %cst {dimension_numbers = #tpu.dot_dimension_numbers<[1], [0], [0], [1], [0, 0, 1, 1], [], []>} : vector<128x128xf32>, vector<128x512xf32>, vector<128x512xf32> -> vector<128x512xf32>
    %c0_4 = arith.constant 0 : index
    %c0_5 = arith.constant 0 : index
    %4 = vector.load %arg4[%c0_4, %c0_5] : memref<1x512xf32, #tpu.memory_space<vmem>>, vector<1x512xf32>
    %5 = vector.broadcast %4 : vector<1x512xf32> to vector<128x512xf32>
    %6 = arith.addf %3, %5 : vector<128x512xf32>
    %c0_6 = arith.constant 0 : index
    %c0_7 = arith.constant 0 : index
    %7 = vector.load %arg16[%c0_6, %c0_7] : memref<128x512xf32, #tpu.memory_space<vmem>>, vector<128x512xf32>
    tpu.vector_store %arg16[%c0_6, %c0_7], %6 {strides = array<i32>} : memref<128x512xf32, #tpu.memory_space<vmem>>, vector<128x512xf32>,
    %c0_8 = arith.constant 0 : index
    %c0_9 = arith.constant 0 : index
    %8 = vector.load %arg3[%c0_8, %c0_9] : memref<128x512xf32, #tpu.memory_space<vmem>>, vector<128x512xf32>
    %c0_10 = arith.constant 0 : index
    %c0_11 = arith.constant 0 : index
    %9 = vector.load %arg5[%c0_10, %c0_11] : memref<128x512xf32, #tpu.memory_space<vmem>>, vector<128x512xf32>
    %c0_12 = arith.constant 0 : index
    %c0_13 = arith.constant 0 : index
    %10 = vector.load %arg6[%c0_12, %c0_13] : memref<128x512xf32, #tpu.memory_space<vmem>>, vector<128x512xf32>
    %c0_14 = arith.constant 0 : index
    %c0_15 = arith.constant 0 : index
    %11 = vector.load %arg7[%c0_14, %c0_15] : memref<1x512xf32, #tpu.memory_space<vmem>>, vector<1x512xf32>
    %cst_16 = arith.constant 0.000000e+00 : f32
    %12 = vector.broadcast %cst_16 : f32 to vector<8x128xf32>
    %c0_i32 = arith.constant 0 : i32
    %c16_i32 = arith.constant 16 : i32
    %13 = arith.addi %c0_i32, %c16_i32 : i32
    %c1_i32 = arith.constant 1 : i32
    %14:4 = scf.for %arg17 = %c0_i32 to %13 step %c1_i32 iter_args(%arg18 = %12, %arg19 = %12, %arg20 = %12, %arg21 = %12) -> (vector<8x128xf32>, vector<8x128xf32>, vector<8x128xf32>, vector<8x128xf32>)  : i32 {
      %c8_i32 = arith.constant 8 : i32
      %36 = arith.muli %arg17, %c8_i32 : i32
      %37 = tpu.assume_multiple %36, 8 : i32
      %38 = arith.index_cast %37 : i32 to index
      %c0_40 = arith.constant 0 : index
      %39 = vector.load %arg16[%38, %c0_40] : memref<128x512xf32, #tpu.memory_space<vmem>>, vector<8x512xf32>
      %cst_41 = arith.constant dense<0.000000e+00> : vector<8x512xf32>
      %40 = tpu.matmul %arg18, %8, %cst_41 {dimension_numbers = #tpu.dot_dimension_numbers<[1], [0], [0], [1], [0, 0, 1, 1], [], []>} : vector<8x128xf32>, vector<128x512xf32>, vector<8x512xf32> -> vector<8x512xf32>
      %41 = arith.addf %39, %40 : vector<8x512xf32>
      %42 = vector.extract_strided_slice %41 {offsets = [0, 0], sizes = [8, 128], strides = [1, 1]} : vector<8x512xf32> to vector<8x128xf32>
      %43 = arith.negf %42 : vector<8x128xf32>
      %44 = math.exp %43 : vector<8x128xf32>
      %cst_42 = arith.constant 1.000000e+00 : f32
      %45 = vector.broadcast %cst_42 : f32 to vector<8x128xf32>
      %46 = arith.addf %45, %44 : vector<8x128xf32>
      %47 = arith.divf %45, %46 : vector<8x128xf32>
      %48 = vector.extract_strided_slice %41 {offsets = [0, 128], sizes = [8, 128], strides = [1, 1]} : vector<8x512xf32> to vector<8x128xf32>
      %49 = arith.negf %48 : vector<8x128xf32>
      %50 = math.exp %49 : vector<8x128xf32>
      %cst_43 = arith.constant 1.000000e+00 : f32
      %51 = vector.broadcast %cst_43 : f32 to vector<8x128xf32>
      %52 = arith.addf %51, %50 : vector<8x128xf32>
      %53 = arith.divf %51, %52 : vector<8x128xf32>
      %54 = vector.extract_strided_slice %41 {offsets = [0, 256], sizes = [8, 128], strides = [1, 1]} : vector<8x512xf32> to vector<8x128xf32>
      %55 = math.tanh %54 : vector<8x128xf32>
      %56 = vector.extract_strided_slice %41 {offsets = [0, 384], sizes = [8, 128], strides = [1, 1]} : vector<8x512xf32> to vector<8x128xf32>
      %57 = arith.negf %56 : vector<8x128xf32>
      %58 = math.exp %57 : vector<8x128xf32>
      %cst_44 = arith.constant 1.000000e+00 : f32
      %59 = vector.broadcast %cst_44 : f32 to vector<8x128xf32>
      %60 = arith.addf %59, %58 : vector<8x128xf32>
      %61 = arith.divf %59, %60 : vector<8x128xf32>
      %62 = arith.mulf %53, %arg19 : vector<8x128xf32>
      %63 = arith.mulf %47, %55 : vector<8x128xf32>
      %64 = arith.addf %62, %63 : vector<8x128xf32>
      %65 = math.tanh %64 : vector<8x128xf32>
      %66 = arith.mulf %61, %65 : vector<8x128xf32>
      %cst_45 = arith.constant dense<0.000000e+00> : vector<8x512xf32>
      %67 = tpu.matmul %66, %9, %cst_45 {dimension_numbers = #tpu.dot_dimension_numbers<[1], [0], [0], [1], [0, 0, 1, 1], [], []>} : vector<8x128xf32>, vector<128x512xf32>, vector<8x512xf32> -> vector<8x512xf32>
      %68 = vector.broadcast %11 : vector<1x512xf32> to vector<8x512xf32>
      %69 = arith.addf %67, %68 : vector<8x512xf32>
      %cst_46 = arith.constant dense<0.000000e+00> : vector<8x512xf32>
      %70 = tpu.matmul %arg20, %10, %cst_46 {dimension_numbers = #tpu.dot_dimension_numbers<[1], [0], [0], [1], [0, 0, 1, 1], [], []>} : vector<8x128xf32>, vector<128x512xf32>, vector<8x512xf32> -> vector<8x512xf32>
      %71 = arith.addf %69, %70 : vector<8x512xf32>
      %72 = vector.extract_strided_slice %71 {offsets = [0, 0], sizes = [8, 128], strides = [1, 1]} : vector<8x512xf32> to vector<8x128xf32>
      %73 = arith.negf %72 : vector<8x128xf32>
      %74 = math.exp %73 : vector<8x128xf32>
      %cst_47 = arith.constant 1.000000e+00 : f32
      %75 = vector.broadcast %cst_47 : f32 to vector<8x128xf32>
      %76 = arith.addf %75, %74 : vector<8x128xf32>
      %77 = arith.divf %75, %76 : vector<8x128xf32>
      %78 = vector.extract_strided_slice %71 {offsets = [0, 128], sizes = [8, 128], strides = [1, 1]} : vector<8x512xf32> to vector<8x128xf32>
      %79 = arith.negf %78 : vector<8x128xf32>
      %80 = math.exp %79 : vector<8x128xf32>
      %cst_48 = arith.constant 1.000000e+00 : f32
      %81 = vector.broadcast %cst_48 : f32 to vector<8x128xf32>
      %82 = arith.addf %81, %80 : vector<8x128xf32>
      %83 = arith.divf %81, %82 : vector<8x128xf32>
      %84 = vector.extract_strided_slice %71 {offsets = [0, 256], sizes = [8, 128], strides = [1, 1]} : vector<8x512xf32> to vector<8x128xf32>
      %85 = math.tanh %84 : vector<8x128xf32>
      %86 = vector.extract_strided_slice %71 {offsets = [0, 384], sizes = [8, 128], strides = [1, 1]} : vector<8x512xf32> to vector<8x128xf32>
      %87 = arith.negf %86 : vector<8x128xf32>
      %88 = math.exp %87 : vector<8x128xf32>
      %cst_49 = arith.constant 1.000000e+00 : f32
      %89 = vector.broadcast %cst_49 : f32 to vector<8x128xf32>
      %90 = arith.addf %89, %88 : vector<8x128xf32>
      %91 = arith.divf %89, %90 : vector<8x128xf32>
      %92 = arith.mulf %83, %arg21 : vector<8x128xf32>
      %93 = arith.mulf %77, %85 : vector<8x128xf32>
      %94 = arith.addf %92, %93 : vector<8x128xf32>
      %95 = math.tanh %94 : vector<8x128xf32>
      %96 = arith.mulf %91, %95 : vector<8x128xf32>
      scf.yield %66, %64, %96, %94 : vector<8x128xf32>, vector<8x128xf32>, vector<8x128xf32>, vector<8x128xf32>
    }
    %c16_i32_17 = arith.constant 16 : i32
    %c0_18 = arith.constant 0 : index
    %c0_19 = arith.constant 0 : index
    %15 = vector.load %arg1[%c0_18, %c0_19] : memref<8x256xf32, #tpu.memory_space<vmem>>, vector<8x256xf32>
    %c0_20 = arith.constant 0 : index
    %c0_21 = arith.constant 0 : index
    %16 = vector.load %arg8[%c0_20, %c0_21] : memref<256x128xf32, #tpu.memory_space<vmem>>, vector<256x128xf32>
    %cst_22 = arith.constant dense<0.000000e+00> : vector<8x128xf32>
    %17 = tpu.matmul %15, %16, %cst_22 {dimension_numbers = #tpu.dot_dimension_numbers<[1], [0], [0], [1], [0, 0, 1, 1], [], []>} : vector<8x256xf32>, vector<256x128xf32>, vector<8x128xf32> -> vector<8x128xf32>
    %c0_23 = arith.constant 0 : index
    %c0_24 = arith.constant 0 : index
    %18 = vector.load %arg9[%c0_23, %c0_24] : memref<1x128xf32, #tpu.memory_space<vmem>>, vector<1x128xf32>
    %19 = vector.broadcast %18 : vector<1x128xf32> to vector<8x128xf32>
    %20 = arith.addf %17, %19 : vector<8x128xf32>
    %cst_25 = arith.constant 0.000000e+00 : f32
    %21 = vector.broadcast %cst_25 : f32 to vector<8x128xf32>
    %22 = arith.maximumf %20, %21 : vector<8x128xf32>
    %23 = tpu.concatenate %14#2, %22 in 1 : vector<8x128xf32>, vector<8x128xf32> -> vector<8x256xf32>
    %c0_26 = arith.constant 0 : index
    %c0_27 = arith.constant 0 : index
    %24 = vector.load %arg10[%c0_26, %c0_27] : memref<256x128xf32, #tpu.memory_space<vmem>>, vector<256x128xf32>
    %cst_28 = arith.constant dense<0.000000e+00> : vector<8x128xf32>
    %25 = tpu.matmul %23, %24, %cst_28 {dimension_numbers = #tpu.dot_dimension_numbers<[1], [0], [0], [1], [0, 0, 1, 1], [], []>} : vector<8x256xf32>, vector<256x128xf32>, vector<8x128xf32> -> vector<8x128xf32>
    %c0_29 = arith.constant 0 : index
    %c0_30 = arith.constant 0 : index
    %26 = vector.load %arg11[%c0_29, %c0_30] : memref<1x128xf32, #tpu.memory_space<vmem>>, vector<1x128xf32>
    %27 = vector.broadcast %26 : vector<1x128xf32> to vector<8x128xf32>
    %28 = arith.addf %25, %27 : vector<8x128xf32>
    %c0_31 = arith.constant 0 : index
    %c0_32 = arith.constant 0 : index
    %29 = vector.load %arg12[%c0_31, %c0_32] : memref<256x128xf32, #tpu.memory_space<vmem>>, vector<256x128xf32>
    %cst_33 = arith.constant dense<0.000000e+00> : vector<8x128xf32>
    %30 = tpu.matmul %23, %29, %cst_33 {dimension_numbers = #tpu.dot_dimension_numbers<[1], [0], [0], [1], [0, 0, 1, 1], [], []>} : vector<8x256xf32>, vector<256x128xf32>, vector<8x128xf32> -> vector<8x128xf32>
    %c0_34 = arith.constant 0 : index
    %c0_35 = arith.constant 0 : index
    %31 = vector.load %arg13[%c0_34, %c0_35] : memref<1x128xf32, #tpu.memory_space<vmem>>, vector<1x128xf32>
    %32 = vector.broadcast %31 : vector<1x128xf32> to vector<8x128xf32>
    %33 = arith.addf %30, %32 : vector<8x128xf32>
    %c0_36 = arith.constant 0 : index
    %c0_37 = arith.constant 0 : index
    %34 = vector.load %arg14[%c0_36, %c0_37] : memref<8x128xf32, #tpu.memory_space<vmem>>, vector<8x128xf32>
    tpu.vector_store %arg14[%c0_36, %c0_37], %28 {strides = array<i32>} : memref<8x128xf32, #tpu.memory_space<vmem>>, vector<8x128xf32>,
    %c0_38 = arith.constant 0 : index
    %c0_39 = arith.constant 0 : index
    %35 = vector.load %arg15[%c0_38, %c0_39] : memref<8x128xf32, #tpu.memory_space<vmem>>, vector<8x128xf32>
    tpu.vector_store %arg15[%c0_38, %c0_39], %33 {strides = array<i32>} : memref<8x128xf32, #tpu.memory_space<vmem>>, vector<8x128xf32>,
    return
  }
}

</mosaic_0001>

<bundles_post_ra>
// kernel: tpu_custom_call.1
= control target key start
LH: loop header
LB: loop body
LE: loop exit
PB: predicated region body
PF: predicated region fallthrough
CT: control target
= control target key end

     0   :  { %21 = vsyncpa [#allocation4], 0  ;;  %s3180_s0 = inlined_call_operand.hbm [shape: f32[16,8,128], index: 0, kind: input, shape index: {}]   ;;  %s3181_s1 = inlined_call_operand.hbm [shape: f32[8,256], index: 1, kind: input, shape index: {}]   ;;  %s3182_s2 = inlined_call_operand.hbm [shape: f32[128,512], index: 2, kind: input, shape index: {}]   ;;  %s3183_s3 = inlined_call_operand.hbm [shape: f32[128,512], index: 3, kind: input, shape index: {}]   ;;  %s3184_s4 = inlined_call_operand.vmem [shape: f32[1,512], index: 4, kind: input, shape index: {}]   ;;  %s3185_s5 = inlined_call_operand.hbm [shape: f32[128,512], index: 5, kind: input, shape index: {}]   ;;  %s3186_s6 = inlined_call_operand.hbm [shape: f32[128,512], index: 6, kind: input, shape index: {}]   ;;  %s3187_s7 = inlined_call_operand.vmem [shape: f32[1,512], index: 7, kind: input, shape index: {}]   ;;  %s3188_s8 = inlined_call_operand.hbm [shape: f32[256,128], index: 8, kind: input, shape index: {}]   ;;  %s3189_s9 = inlined_call_operand.vmem [shape: f32[1,128], index: 9, kind: input, shape index: {}]   ;;  %s3190_s10 = inlined_call_operand.hbm [shape: f32[256,128], index: 10, kind: input, shape index: {}]   ;;  %s3191_s11 = inlined_call_operand.vmem [shape: f32[1,128], index: 11, kind: input, shape index: {}]   ;;  %s3192_s12 = inlined_call_operand.hbm [shape: f32[256,128], index: 12, kind: input, shape index: {}]   ;;  %s3193_s13 = inlined_call_operand.vmem [shape: f32[1,128], index: 13, kind: input, shape index: {}]   ;;  %s3194_s14 = inlined_call_operand.hbm [shape: f32[8,128], index: 14, kind: output, shape index: {0}]   ;;  %s3195_s15 = inlined_call_operand.hbm [shape: f32[8,128], index: 15, kind: output, shape index: {1}]  }
   0x1   :  { %22 = vsyncpa [#allocation7], 0 }
   0x2   :  { %23 = vsyncpa [#allocation10], 0 }
   0x3   :  { %24 = vsyncpa [#allocation13], 0 }
   0x4   :  { %25 = vsyncpa [#allocation16], 0 }
   0x5   :  { %26 = vsyncpa [#allocation5], 0 }
   0x6   :  { %27 = vsyncpa [#allocation20], 0  ;;  %s2240_s18 = smov [#allocation6]  }
   0x7   :  { %s46_s19 = sshll.u32 %s2240_s18, 4  ;;  %s47_s19 = int_to_ptr.vmem [resolvable:$true] %s46_s19 }
   0x8   :  { %s1974_s20 = scalar_lea.vmem %s47_s19, 256  ;;  %p1979_p1 = scmp.lt.s32.totalorder %s47_s19, %s47_s19 }
   0x9   :  { %p1975_p0 = scmp.ne.s32.totalorder %s47_s19, %s1974_s20  ;;  %p1980_p2 = scmp.lt.s32.totalorder %s1974_s20, %s1974_s20 }
   0xb   :  { %p1981_p3 = por %p1980_p2, %p1979_p1 }
   0xd   :  { %p1982_p4 = pnand %p1981_p3, %p1975_p0 }
   0xf   :  { %1985 = shalt.err (!%p1982_p4)
}
  0x10   :  { %49 = dma.hbm_to_vmem [thread:$0]  %s3181_s1, 256, %s47_s19, [#allocation7]  }
  0x11   :  { %s2241_s23 = smov [#allocation9]   ;;  %s2242_s25 = smov [#allocation12]  }
  0x12   :  { %s67_s24 = sshll.u32 %s2241_s23, 4  ;;  %s93_s26 = sshll.u32 %s2242_s25, 4  ;;  %s68_s24 = int_to_ptr.vmem [resolvable:$true] %s67_s24  ;;  %s94_s26 = int_to_ptr.vmem [resolvable:$true] %s93_s26 }
  0x13   :  { %s1994_s27 = scalar_lea.vmem %s68_s24, 8192  ;;  %p1999_p6 = scmp.lt.s32.totalorder %s68_s24, %s68_s24 }
  0x14   :  { %p1995_p5 = scmp.ne.s32.totalorder %s68_s24, %s1994_s27  ;;  %p2000_p7 = scmp.lt.s32.totalorder %s1994_s27, %s1994_s27 }
  0x16   :  { %p2001_p8 = por %p2000_p7, %p1999_p6 }
  0x18   :  { %p2002_p9 = pnand %p2001_p8, %p1995_p5 }
  0x1a   :  { %2005 = shalt.err (!%p2002_p9)
}
  0x1b   :  { %s2243_s28 = smov 512   ;;  %s2244_s29 = smov 32  }
  0x1c   :  { %73 = dma.hbm_to_vmem [thread:$0]  %s3183_s3, 8192, %s68_s24, [#allocation10], %s2243_s28, %s2243_s28, %s2244_s29  }
  0x1d   :  { %s2014_s1 = scalar_lea.vmem %s94_s26, 8192  ;;  %p2019_p11 = scmp.lt.s32.totalorder %s94_s26, %s94_s26 }
  0x1e   :  { %p2015_p10 = scmp.ne.s32.totalorder %s94_s26, %s2014_s1  ;;  %p2020_p12 = scmp.lt.s32.totalorder %s2014_s1, %s2014_s1 }
  0x20   :  { %p2021_p13 = por %p2020_p12, %p2019_p11 }
  0x22   :  { %p2022_p0 = pnand %p2021_p13, %p2015_p10 }
  0x24   :  { %2025 = shalt.err (!%p2022_p0)
}
  0x25   :  { %99 = dma.hbm_to_vmem [thread:$0]  %s3186_s6, 8192, %s94_s26, [#allocation13], %s2243_s28, %s2243_s28, %s2244_s29  }
  0x26   :  { %s2245_s19 = smov [#allocation15]   ;;  %s2246_s21 = smov [#allocation3]  }
  0x27   :  { %s121_s20 = sshll.u32 %s2245_s19, 4  ;;  %s33_s3 = sshll.u32 %s2246_s21, 4  ;;  %s122_s20 = int_to_ptr.vmem [resolvable:$true] %s121_s20  ;;  %s34_s3 = int_to_ptr.vmem [resolvable:$true] %s33_s3 }
  0x28   :  { %s2034_s22 = scalar_lea.vmem %s122_s20, 4096  ;;  %p2039_p2 = scmp.lt.s32.totalorder %s122_s20, %s122_s20 }
  0x29   :  { %p2035_p1 = scmp.ne.s32.totalorder %s122_s20, %s2034_s22  ;;  %p2040_p3 = scmp.lt.s32.totalorder %s2034_s22, %s2034_s22 }
  0x2b   :  { %p2041_p4 = por %p2040_p3, %p2039_p2 }
  0x2d   :  { %p2042_p5 = pnand %p2041_p4, %p2035_p1 }
  0x2f   :  { %2045 = shalt.err (!%p2042_p5)
}
  0x30   :  { %s2247_s23 = smov 128   ;;  %s2248_s24 = smov 8  }
  0x31   :  { %127 = dma.hbm_to_vmem [thread:$0]  %s3190_s10, 4096, %s122_s20, [#allocation16], %s2247_s23, %s2247_s23, %s2248_s24  }
  0x32   :  { %s2054_s6 = scalar_lea.vmem %s34_s3, 2048  ;;  %p2059_p7 = scmp.lt.s32.totalorder %s34_s3, %s34_s3 }
  0x33   :  { %p2055_p6 = scmp.ne.s32.totalorder %s34_s3, %s2054_s6  ;;  %p2060_p8 = scmp.lt.s32.totalorder %s2054_s6, %s2054_s6 }
  0x35   :  { %p2061_p9 = por %p2060_p8, %p2059_p7 }
  0x37   :  { %p2062_p10 = pnand %p2061_p9, %p2055_p6 }
  0x39   :  { %2065 = shalt.err (!%p2062_p10)
}
  0x3a   :  { %39 = dma.hbm_to_vmem [thread:$0]  %s3180_s0, 2048, %s34_s3, [#allocation4], %s2247_s23, %s2247_s23, %s2248_s24  }
  0x3b   :  { %s2249_s16 = smov [#allocation8]   ;;  %s2250_s17 = smov [#allocation11]  }
  0x3c   :  { %s55_s1 = sshll.u32 %s2249_s16, 4  ;;  %s81_s10 = sshll.u32 %s2250_s17, 4  ;;  %s56_s1 = int_to_ptr.vmem [resolvable:$true] %s55_s1  ;;  %s82_s10 = int_to_ptr.vmem [resolvable:$true] %s81_s10 }
  0x3d   :  { %s2074_s18 = scalar_lea.vmem %s56_s1, 8192  ;;  %p2079_p12 = scmp.lt.s32.totalorder %s56_s1, %s56_s1 }
  0x3e   :  { %p2075_p11 = scmp.ne.s32.totalorder %s56_s1, %s2074_s18  ;;  %p2080_p13 = scmp.lt.s32.totalorder %s2074_s18, %s2074_s18 }
  0x40   :  { %p2081_p0 = por %p2080_p13, %p2079_p12 }
  0x42   :  { %p2082_p1 = pnand %p2081_p0, %p2075_p11 }
  0x44   :  { %2085 = shalt.err (!%p2082_p1)
}
  0x45   :  { %61 = dma.hbm_to_vmem [thread:$0]  %s3182_s2, 8192, %s56_s1, [#allocation7], %s2243_s28, %s2243_s28, %s2244_s29  }
  0x46   :  { %s2094_s0 = scalar_lea.vmem %s82_s10, 8192  ;;  %p2099_p3 = scmp.lt.s32.totalorder %s82_s10, %s82_s10 }
  0x47   :  { %p2095_p2 = scmp.ne.s32.totalorder %s82_s10, %s2094_s0  ;;  %p2100_p4 = scmp.lt.s32.totalorder %s2094_s0, %s2094_s0 }
  0x49   :  { %p2101_p5 = por %p2100_p4, %p2099_p3 }
  0x4b   :  { %p2102_p6 = pnand %p2101_p5, %p2095_p2 }
  0x4d   :  { %2105 = shalt.err (!%p2102_p6)
}
  0x4e   :  { %87 = dma.hbm_to_vmem [thread:$0]  %s3185_s5, 8192, %s82_s10, [#allocation10], %s2243_s28, %s2243_s28, %s2244_s29  }
  0x4f   :  { %s2251_s22 = smov [#allocation14]   ;;  %s2252_s27 = smov [#allocation17]  }
  0x50   :  { %s107_s25 = sshll.u32 %s2251_s22, 4  ;;  %s135_s2 = sshll.u32 %s2252_s27, 4  ;;  %s108_s25 = int_to_ptr.vmem [resolvable:$true] %s107_s25  ;;  %s136_s2 = int_to_ptr.vmem [resolvable:$true] %s135_s2 }
  0x51   :  { %s2114_s6 = scalar_lea.vmem %s108_s25, 4096  ;;  %p2119_p8 = scmp.lt.s32.totalorder %s108_s25, %s108_s25 }
  0x52   :  { %p2115_p7 = scmp.ne.s32.totalorder %s108_s25, %s2114_s6  ;;  %p2120_p9 = scmp.lt.s32.totalorder %s2114_s6, %s2114_s6 }
  0x54   :  { %p2121_p10 = por %p2120_p9, %p2119_p8 }
  0x56   :  { %p2122_p11 = pnand %p2121_p10, %p2115_p7 }
  0x58   :  { %2125 = shalt.err (!%p2122_p11)
}
  0x59   :  { %113 = dma.hbm_to_vmem [thread:$0]  %s3188_s8, 4096, %s108_s25, [#allocation13], %s2247_s23, %s2247_s23, %s2248_s24  }
  0x5a   :  { %s2134_s5 = scalar_lea.vmem %s136_s2, 4096  ;;  %p2139_p13 = scmp.lt.s32.totalorder %s136_s2, %s136_s2 }
  0x5b   :  { %p2135_p12 = scmp.ne.s32.totalorder %s136_s2, %s2134_s5  ;;  %p2140_p0 = scmp.lt.s32.totalorder %s2134_s5, %s2134_s5 }
  0x5d   :  { %p2141_p1 = por %p2140_p0, %p2139_p13 }
  0x5f   :  { %p2142_p2 = pnand %p2141_p1, %p2135_p12 }
  0x61   :  { %2145 = shalt.err (!%p2142_p2)
}
  0x62   :  { %141 = dma.hbm_to_vmem [thread:$0]  %s3192_s12, 4096, %s136_s2, [#allocation16], %s2247_s23, %s2247_s23, %s2248_s24  }
  0x63   :  { %2206 = dma.done.wait [#allocation4], 2048  }
  0x64   :  { %2207 = vsyncadd [#allocation4], 4294965248 }
  0x65   :  { %2208 = dma.done.wait [#allocation7], 8448  }
  0x66   :  { %2209 = vsyncadd [#allocation7], 4294958848 }
  0x67   :  { %2210 = dma.done.wait [#allocation10], 16384  }
  0x68   :  { %2211 = vsyncadd [#allocation10], 4294950912 }
  0x69   :  { %2212 = dma.done.wait [#allocation13], 12288  }
  0x6a   :  { %2213 = vsyncadd [#allocation13], 4294955008 }
  0x6b   :  { %2214 = dma.done.wait [#allocation16], 8192  }
  0x6c   :  { %2215 = vsyncadd [#allocation16], 4294959104  ;;  %v3196_v0 = vmov 0.0   ;;  %v2390_v1 = vld [vmem:[#allocation9] sm:$0xff]  ;;  %v2392_v2 = vld [vmem:[#allocation9 + $0x8] sm:$0xff] }
  0x6d   :  { %337 = vmatprep.mubr.f32.mxu0 %v3196_v0  ;;  %498 = vmatprep.mubr.f32.mxu1 %v3196_v0  ;;  %3208 = vst [vmem:[#allocation28_spill] sm:$0xff] %v2390_v1  ;;  %3209 = vst [vmem:[#allocation29_spill] sm:$0xff] %v2392_v2  ;;  %v2394_v3 = vld [vmem:[#allocation9 + $0x10] sm:$0xff]  ;;  %v2396_v4 = vld [vmem:[#allocation9 + $0x18] sm:$0xff] }
  0x6e   :  { %3210 = vst [vmem:[#allocation30_spill] sm:$0xff] %v2394_v3  ;;  %3211 = vst [vmem:[#allocation31_spill] sm:$0xff] %v2396_v4  ;;  %v2398_v5 = vld [vmem:[#allocation9 + $0x20] sm:$0xff]  ;;  %v2400_v6 = vld [vmem:[#allocation9 + $0x28] sm:$0xff] }
  0x6f   :  { %3212 = vst [vmem:[#allocation32_spill] sm:$0xff] %v2398_v5  ;;  %3213 = vst [vmem:[#allocation33_spill] sm:$0xff] %v2400_v6  ;;  %v2402_v7 = vld [vmem:[#allocation9 + $0x30] sm:$0xff]  ;;  %v2404_v8 = vld [vmem:[#allocation9 + $0x38] sm:$0xff] }
  0x70   :  { %3214 = vst [vmem:[#allocation34_spill] sm:$0xff] %v2402_v7  ;;  %3215 = vst [vmem:[#allocation35_spill] sm:$0xff] %v2404_v8  ;;  %v2406_v9 = vld [vmem:[#allocation9 + $0x40] sm:$0xff]  ;;  %v2408_v10 = vld [vmem:[#allocation9 + $0x48] sm:$0xff] }
  0x71   :  { %3216 = vst [vmem:[#allocation36_spill] sm:$0xff] %v2406_v9  ;;  %3217 = vst [vmem:[#allocation37_spill] sm:$0xff] %v2408_v10  ;;  %v2410_v11 = vld [vmem:[#allocation9 + $0x50] sm:$0xff]  ;;  %v2412_v12 = vld [vmem:[#allocation9 + $0x58] sm:$0xff] }
  0x72   :  { %3218 = vst [vmem:[#allocation38_spill] sm:$0xff] %v2410_v11  ;;  %3219 = vst [vmem:[#allocation39_spill] sm:$0xff] %v2412_v12  ;;  %v2414_v13 = vld [vmem:[#allocation9 + $0x60] sm:$0xff]  ;;  %v2416_v14 = vld [vmem:[#allocation9 + $0x68] sm:$0xff] }
  0x73   :  { %3220 = vst [vmem:[#allocation40_spill] sm:$0xff] %v2414_v13  ;;  %3221 = vst [vmem:[#allocation41_spill] sm:$0xff] %v2416_v14  ;;  %v2418_v15 = vld [vmem:[#allocation9 + $0x70] sm:$0xff]  ;;  %v2420_v16 = vld [vmem:[#allocation9 + $0x78] sm:$0xff] }
  0x74   :  { %3222 = vst [vmem:[#allocation42_spill] sm:$0xff] %v2418_v15  ;;  %3223 = vst [vmem:[#allocation43_spill] sm:$0xff] %v2420_v16  ;;  %v2422_v17 = vld [vmem:[#allocation9 + $0x80] sm:$0xff]  ;;  %v2424_v18 = vld [vmem:[#allocation9 + $0x88] sm:$0xff] }
  0x75   :  { %3224 = vst [vmem:[#allocation44_spill] sm:$0xff] %v2422_v17  ;;  %3225 = vst [vmem:[#allocation45_spill] sm:$0xff] %v2424_v18  ;;  %v2426_v19 = vld [vmem:[#allocation9 + $0x90] sm:$0xff]  ;;  %v2428_v20 = vld [vmem:[#allocation9 + $0x98] sm:$0xff] }
  0x76   :  { %3226 = vst [vmem:[#allocation46_spill] sm:$0xff] %v2426_v19  ;;  %3227 = vst [vmem:[#allocation47_spill] sm:$0xff] %v2428_v20  ;;  %v2430_v21 = vld [vmem:[#allocation9 + $0xa0] sm:$0xff]  ;;  %v2432_v22 = vld [vmem:[#allocation9 + $0xa8] sm:$0xff] }
  0x77   :  { %3228 = vst [vmem:[#allocation48_spill] sm:$0xff] %v2430_v21  ;;  %3229 = vst [vmem:[#allocation49_spill] sm:$0xff] %v2432_v22  ;;  %v2434_v23 = vld [vmem:[#allocation9 + $0xb0] sm:$0xff]  ;;  %v2436_v24 = vld [vmem:[#allocation9 + $0xb8] sm:$0xff] }
  0x78   :  { %3230 = vst [vmem:[#allocation50_spill] sm:$0xff] %v2434_v23  ;;  %v2438_v25 = vld [vmem:[#allocation9 + $0xc0] sm:$0xff]  ;;  %v2440_v26 = vld [vmem:[#allocation9 + $0xc8] sm:$0xff]  ;;  %v2442_v27 = vld [vmem:[#allocation9 + $0xd0] sm:$0xff] }
  0x79   :  { %v2444_v28 = vld [vmem:[#allocation9 + $0xd8] sm:$0xff]  ;;  %v2446_v29 = vld [vmem:[#allocation9 + $0xe0] sm:$0xff]  ;;  %v2448_v30 = vld [vmem:[#allocation9 + $0xe8] sm:$0xff] }
  0x7a   :  { %v2450_v31 = vld [vmem:[#allocation9 + $0xf0] sm:$0xff]  ;;  %v2452_v32 = vld [vmem:[#allocation9 + $0xf8] sm:$0xff]  ;;  %v2454_v33 = vld [vmem:[#allocation9 + $0x100] sm:$0xff] }
  0x7b   :  { %v2456_v34 = vld [vmem:[#allocation9 + $0x108] sm:$0xff]  ;;  %v2458_v35 = vld [vmem:[#allocation9 + $0x110] sm:$0xff]  ;;  %v2460_v36 = vld [vmem:[#allocation9 + $0x118] sm:$0xff] }
  0x7c   :  { %v2462_v37 = vld [vmem:[#allocation9 + $0x120] sm:$0xff]  ;;  %v2464_v38 = vld [vmem:[#allocation9 + $0x128] sm:$0xff]  ;;  %v2466_v39 = vld [vmem:[#allocation9 + $0x130] sm:$0xff] }
  0x7d   :  { %v2468_v40 = vld [vmem:[#allocation9 + $0x138] sm:$0xff]  ;;  %v2470_v41 = vld [vmem:[#allocation9 + $0x140] sm:$0xff]  ;;  %v2472_v42 = vld [vmem:[#allocation9 + $0x148] sm:$0xff] }
  0x7e   :  { %v2474_v43 = vld [vmem:[#allocation9 + $0x150] sm:$0xff]  ;;  %v2476_v44 = vld [vmem:[#allocation9 + $0x158] sm:$0xff]  ;;  %v2478_v45 = vld [vmem:[#allocation9 + $0x160] sm:$0xff] }
  0x7f   :  { %v2480_v46 = vld [vmem:[#allocation9 + $0x168] sm:$0xff]  ;;  %v2482_v47 = vld [vmem:[#allocation9 + $0x170] sm:$0xff]  ;;  %v2484_v48 = vld [vmem:[#allocation9 + $0x178] sm:$0xff] }
  0x80   :  { %v2486_v49 = vld [vmem:[#allocation9 + $0x180] sm:$0xff]  ;;  %v2488_v50 = vld [vmem:[#allocation9 + $0x188] sm:$0xff]  ;;  %v2490_v51 = vld [vmem:[#allocation9 + $0x190] sm:$0xff] }
  0x81   :  { %v2492_v52 = vld [vmem:[#allocation9 + $0x198] sm:$0xff]  ;;  %v2494_v53 = vld [vmem:[#allocation9 + $0x1a0] sm:$0xff]  ;;  %v2496_v54 = vld [vmem:[#allocation9 + $0x1a8] sm:$0xff] }
  0x82   :  { %v2498_v55 = vld [vmem:[#allocation9 + $0x1b0] sm:$0xff]  ;;  %v2500_v56 = vld [vmem:[#allocation9 + $0x1b8] sm:$0xff]  ;;  %v2502_v57 = vld [vmem:[#allocation9 + $0x1c0] sm:$0xff] }
  0x83   :  { %v2504_v58 = vld [vmem:[#allocation9 + $0x1c8] sm:$0xff]  ;;  %v2506_v59 = vld [vmem:[#allocation9 + $0x1d0] sm:$0xff]  ;;  %v2508_v60 = vld [vmem:[#allocation9 + $0x1d8] sm:$0xff] }
  0x84   :  { %v2510_v61 = vld [vmem:[#allocation9 + $0x1e0] sm:$0xff]  ;;  %v2512_v62 = vld [vmem:[#allocation9 + $0x1e8] sm:$0xff]  ;;  %v2514_v63 = vld [vmem:[#allocation9 + $0x1f0] sm:$0xff] }
  0x85   :  { %v2516_v0 = vld [vmem:[#allocation9 + $0x1f8] sm:$0xff]  ;;  %v2518_v3 = vld [vmem:[#allocation11] sm:$0xff]  ;;  %v2520_v4 = vld [vmem:[#allocation11 + $0x8] sm:$0xff] }
  0x86   :  { %3231 = vst [vmem:[#allocation51_spill] sm:$0xff] %v2516_v0  ;;  %3232 = vst [vmem:[#allocation52_spill] sm:$0xff] %v2518_v3  ;;  %v2522_v1 = vld [vmem:[#allocation11 + $0x10] sm:$0xff]  ;;  %v2524_v7 = vld [vmem:[#allocation11 + $0x18] sm:$0xff] }
  0x87   :  { %3233 = vst [vmem:[#allocation53_spill] sm:$0xff] %v2520_v4  ;;  %3234 = vst [vmem:[#allocation54_spill] sm:$0xff] %v2522_v1  ;;  %v2526_v2 = vld [vmem:[#allocation11 + $0x20] sm:$0xff]  ;;  %v2528_v8 = vld [vmem:[#allocation11 + $0x28] sm:$0xff] }
  0x88   :  { %3235 = vst [vmem:[#allocation55_spill] sm:$0xff] %v2524_v7  ;;  %3236 = vst [vmem:[#allocation56_spill] sm:$0xff] %v2526_v2  ;;  %v2530_v5 = vld [vmem:[#allocation11 + $0x30] sm:$0xff]  ;;  %v2532_v11 = vld [vmem:[#allocation11 + $0x38] sm:$0xff] }
  0x89   :  { %3237 = vst [vmem:[#allocation57_spill] sm:$0xff] %v2528_v8  ;;  %3238 = vst [vmem:[#allocation58_spill] sm:$0xff] %v2530_v5  ;;  %v2534_v6 = vld [vmem:[#allocation11 + $0x40] sm:$0xff]  ;;  %v2536_v12 = vld [vmem:[#allocation11 + $0x48] sm:$0xff] }
  0x8a   :  { %3239 = vst [vmem:[#allocation59_spill] sm:$0xff] %v2532_v11  ;;  %3240 = vst [vmem:[#allocation60_spill] sm:$0xff] %v2534_v6  ;;  %v2538_v9 = vld [vmem:[#allocation11 + $0x50] sm:$0xff]  ;;  %v2540_v3 = vld [vmem:[#allocation11 + $0x58] sm:$0xff] }
  0x8b   :  { %3241 = vst [vmem:[#allocation61_spill] sm:$0xff] %v2536_v12  ;;  %3242 = vst [vmem:[#allocation62_spill] sm:$0xff] %v2538_v9  ;;  %v2542_v4 = vld [vmem:[#allocation11 + $0x60] sm:$0xff]  ;;  %v2544_v1 = vld [vmem:[#allocation11 + $0x68] sm:$0xff] }
  0x8c   :  { %3243 = vst [vmem:[#allocation63_spill] sm:$0xff] %v2540_v3  ;;  %3244 = vst [vmem:[#allocation64_spill] sm:$0xff] %v2542_v4  ;;  %v2546_v7 = vld [vmem:[#allocation11 + $0x70] sm:$0xff]  ;;  %v2548_v2 = vld [vmem:[#allocation11 + $0x78] sm:$0xff] }
  0x8d   :  { %3245 = vst [vmem:[#allocation65_spill] sm:$0xff] %v2544_v1  ;;  %3246 = vst [vmem:[#allocation66_spill] sm:$0xff] %v2546_v7  ;;  %v2550_v8 = vld [vmem:[#allocation11 + $0x80] sm:$0xff]  ;;  %v2552_v5 = vld [vmem:[#allocation11 + $0x88] sm:$0xff] }
  0x8e   :  { %3247 = vst [vmem:[#allocation67_spill] sm:$0xff] %v2548_v2  ;;  %3248 = vst [vmem:[#allocation68_spill] sm:$0xff] %v2550_v8  ;;  %v2554_v11 = vld [vmem:[#allocation11 + $0x90] sm:$0xff]  ;;  %v2556_v6 = vld [vmem:[#allocation11 + $0x98] sm:$0xff] }
  0x8f   :  { %3249 = vst [vmem:[#allocation69_spill] sm:$0xff] %v2552_v5  ;;  %3250 = vst [vmem:[#allocation70_spill] sm:$0xff] %v2554_v11  ;;  %v2558_v12 = vld [vmem:[#allocation11 + $0xa0] sm:$0xff]  ;;  %v2560_v9 = vld [vmem:[#allocation11 + $0xa8] sm:$0xff] }
  0x90   :  { %3251 = vst [vmem:[#allocation71_spill] sm:$0xff] %v2556_v6  ;;  %3252 = vst [vmem:[#allocation72_spill] sm:$0xff] %v2558_v12  ;;  %v2562_v3 = vld [vmem:[#allocation11 + $0xb0] sm:$0xff]  ;;  %v2564_v4 = vld [vmem:[#allocation11 + $0xb8] sm:$0xff] }
  0x91   :  { %3253 = vst [vmem:[#allocation73_spill] sm:$0xff] %v2560_v9  ;;  %3254 = vst [vmem:[#allocation74_spill] sm:$0xff] %v2562_v3  ;;  %v2566_v1 = vld [vmem:[#allocation11 + $0xc0] sm:$0xff]  ;;  %v2568_v7 = vld [vmem:[#allocation11 + $0xc8] sm:$0xff] }
  0x92   :  { %3255 = vst [vmem:[#allocation75_spill] sm:$0xff] %v2564_v4  ;;  %3256 = vst [vmem:[#allocation76_spill] sm:$0xff] %v2566_v1  ;;  %v2570_v2 = vld [vmem:[#allocation11 + $0xd0] sm:$0xff]  ;;  %v2572_v8 = vld [vmem:[#allocation11 + $0xd8] sm:$0xff] }
  0x93   :  { %3257 = vst [vmem:[#allocation77_spill] sm:$0xff] %v2568_v7  ;;  %3258 = vst [vmem:[#allocation78_spill] sm:$0xff] %v2570_v2  ;;  %v2574_v5 = vld [vmem:[#allocation11 + $0xe0] sm:$0xff]  ;;  %v2576_v11 = vld [vmem:[#allocation11 + $0xe8] sm:$0xff] }
  0x94   :  { %3259 = vst [vmem:[#allocation79_spill] sm:$0xff] %v2572_v8  ;;  %3260 = vst [vmem:[#allocation80_spill] sm:$0xff] %v2574_v5  ;;  %v2578_v6 = vld [vmem:[#allocation11 + $0xf0] sm:$0xff]  ;;  %v2580_v12 = vld [vmem:[#allocation11 + $0xf8] sm:$0xff] }
  0x95   :  { %3261 = vst [vmem:[#allocation81_spill] sm:$0xff] %v2576_v11  ;;  %3262 = vst [vmem:[#allocation82_spill] sm:$0xff] %v2578_v6  ;;  %v2582_v9 = vld [vmem:[#allocation11 + $0x100] sm:$0xff]  ;;  %v2584_v3 = vld [vmem:[#allocation11 + $0x108] sm:$0xff] }
  0x96   :  { %3263 = vst [vmem:[#allocation83_spill] sm:$0xff] %v2580_v12  ;;  %3264 = vst [vmem:[#allocation84_spill] sm:$0xff] %v2582_v9  ;;  %v2586_v4 = vld [vmem:[#allocation11 + $0x110] sm:$0xff]  ;;  %v2588_v1 = vld [vmem:[#allocation11 + $0x118] sm:$0xff] }
  0x97   :  { %3265 = vst [vmem:[#allocation85_spill] sm:$0xff] %v2584_v3  ;;  %3266 = vst [vmem:[#allocation86_spill] sm:$0xff] %v2586_v4  ;;  %v2590_v7 = vld [vmem:[#allocation11 + $0x120] sm:$0xff]  ;;  %v2592_v2 = vld [vmem:[#allocation11 + $0x128] sm:$0xff] }
  0x98   :  { %3267 = vst [vmem:[#allocation87_spill] sm:$0xff] %v2588_v1  ;;  %3268 = vst [vmem:[#allocation88_spill] sm:$0xff] %v2590_v7  ;;  %v2594_v8 = vld [vmem:[#allocation11 + $0x130] sm:$0xff]  ;;  %v2596_v5 = vld [vmem:[#allocation11 + $0x138] sm:$0xff] }
  0x99   :  { %3269 = vst [vmem:[#allocation89_spill] sm:$0xff] %v2592_v2  ;;  %3270 = vst [vmem:[#allocation90_spill] sm:$0xff] %v2594_v8  ;;  %v2598_v11 = vld [vmem:[#allocation11 + $0x140] sm:$0xff]  ;;  %v2600_v6 = vld [vmem:[#allocation11 + $0x148] sm:$0xff] }
  0x9a   :  { %3271 = vst [vmem:[#allocation91_spill] sm:$0xff] %v2596_v5  ;;  %3272 = vst [vmem:[#allocation92_spill] sm:$0xff] %v2598_v11  ;;  %v2602_v12 = vld [vmem:[#allocation11 + $0x150] sm:$0xff]  ;;  %v2604_v9 = vld [vmem:[#allocation11 + $0x158] sm:$0xff] }
  0x9b   :  { %3273 = vst [vmem:[#allocation93_spill] sm:$0xff] %v2600_v6  ;;  %3274 = vst [vmem:[#allocation94_spill] sm:$0xff] %v2602_v12  ;;  %v2606_v3 = vld [vmem:[#allocation11 + $0x160] sm:$0xff]  ;;  %v2608_v4 = vld [vmem:[#allocation11 + $0x168] sm:$0xff] }
  0x9c   :  { %3275 = vst [vmem:[#allocation95_spill] sm:$0xff] %v2604_v9  ;;  %3276 = vst [vmem:[#allocation96_spill] sm:$0xff] %v2606_v3  ;;  %v2610_v1 = vld [vmem:[#allocation11 + $0x170] sm:$0xff]  ;;  %v2612_v7 = vld [vmem:[#allocation11 + $0x178] sm:$0xff] }
  0x9d   :  { %3277 = vst [vmem:[#allocation97_spill] sm:$0xff] %v2608_v4  ;;  %3278 = vst [vmem:[#allocation98_spill] sm:$0xff] %v2610_v1  ;;  %v2614_v2 = vld [vmem:[#allocation11 + $0x180] sm:$0xff]  ;;  %v2616_v8 = vld [vmem:[#allocation11 + $0x188] sm:$0xff] }
  0x9e   :  { %3279 = vst [vmem:[#allocation99_spill] sm:$0xff] %v2612_v7  ;;  %3280 = vst [vmem:[#allocation100_spill] sm:$0xff] %v2614_v2  ;;  %v2618_v5 = vld [vmem:[#allocation11 + $0x190] sm:$0xff]  ;;  %v2620_v11 = vld [vmem:[#allocation11 + $0x198] sm:$0xff] }
  0x9f   :  { %3281 = vst [vmem:[#allocation101_spill] sm:$0xff] %v2616_v8  ;;  %3282 = vst [vmem:[#allocation102_spill] sm:$0xff] %v2618_v5  ;;  %v2622_v6 = vld [vmem:[#allocation11 + $0x1a0] sm:$0xff]  ;;  %v2624_v12 = vld [vmem:[#allocation11 + $0x1a8] sm:$0xff] }
  0xa0   :  { %3283 = vst [vmem:[#allocation103_spill] sm:$0xff] %v2620_v11  ;;  %3284 = vst [vmem:[#allocation104_spill] sm:$0xff] %v2622_v6  ;;  %v2626_v9 = vld [vmem:[#allocation11 + $0x1b0] sm:$0xff]  ;;  %v2628_v3 = vld [vmem:[#allocation11 + $0x1b8] sm:$0xff] }
  0xa1   :  { %3285 = vst [vmem:[#allocation105_spill] sm:$0xff] %v2624_v12  ;;  %3286 = vst [vmem:[#allocation106_spill] sm:$0xff] %v2626_v9  ;;  %v2630_v4 = vld [vmem:[#allocation11 + $0x1c0] sm:$0xff]  ;;  %v2632_v1 = vld [vmem:[#allocation11 + $0x1c8] sm:$0xff] }
  0xa2   :  { %3287 = vst [vmem:[#allocation107_spill] sm:$0xff] %v2628_v3  ;;  %3288 = vst [vmem:[#allocation108_spill] sm:$0xff] %v2630_v4  ;;  %v2634_v7 = vld [vmem:[#allocation11 + $0x1d0] sm:$0xff]  ;;  %v2636_v2 = vld [vmem:[#allocation11 + $0x1d8] sm:$0xff] }
  0xa3   :  { %3289 = vst [vmem:[#allocation109_spill] sm:$0xff] %v2632_v1  ;;  %3290 = vst [vmem:[#allocation110_spill] sm:$0xff] %v2634_v7  ;;  %v2638_v8 = vld [vmem:[#allocation11 + $0x1e0] sm:$0xff]  ;;  %v2640_v5 = vld [vmem:[#allocation11 + $0x1e8] sm:$0xff] }
  0xa4   :  { %3291 = vst [vmem:[#allocation111_spill] sm:$0xff] %v2636_v2  ;;  %3292 = vst [vmem:[#allocation112_spill] sm:$0xff] %v2638_v8  ;;  %v2642_v11 = vld [vmem:[#allocation11 + $0x1f0] sm:$0xff]  ;;  %v2644_v6 = vld [vmem:[#allocation11 + $0x1f8] sm:$0xff] }
  0xa5   :  { %3293 = vst [vmem:[#allocation113_spill] sm:$0xff] %v2640_v5  ;;  %3294 = vst [vmem:[#allocation114_spill] sm:$0xff] %v2642_v11  ;;  %v2646_v12 = vld [vmem:[#allocation12] sm:$0xff]  ;;  %v2648_v9 = vld [vmem:[#allocation12 + $0x8] sm:$0xff] }
  0xa6   :  { %3295 = vst [vmem:[#allocation115_spill] sm:$0xff] %v2644_v6  ;;  %3296 = vst [vmem:[#allocation116_spill] sm:$0xff] %v2646_v12  ;;  %v2650_v3 = vld [vmem:[#allocation12 + $0x10] sm:$0xff]  ;;  %v2652_v4 = vld [vmem:[#allocation12 + $0x18] sm:$0xff] }
  0xa7   :  { %3297 = vst [vmem:[#allocation117_spill] sm:$0xff] %v2648_v9  ;;  %3298 = vst [vmem:[#allocation118_spill] sm:$0xff] %v2650_v3  ;;  %v2654_v1 = vld [vmem:[#allocation12 + $0x20] sm:$0xff]  ;;  %v2656_v7 = vld [vmem:[#allocation12 + $0x28] sm:$0xff] }
  0xa8   :  { %3299 = vst [vmem:[#allocation119_spill] sm:$0xff] %v2652_v4  ;;  %3300 = vst [vmem:[#allocation120_spill] sm:$0xff] %v2654_v1  ;;  %v2658_v2 = vld [vmem:[#allocation12 + $0x30] sm:$0xff]  ;;  %v2660_v8 = vld [vmem:[#allocation12 + $0x38] sm:$0xff] }
  0xa9   :  { %3301 = vst [vmem:[#allocation121_spill] sm:$0xff] %v2656_v7  ;;  %3302 = vst [vmem:[#allocation122_spill] sm:$0xff] %v2658_v2  ;;  %v2662_v5 = vld [vmem:[#allocation12 + $0x40] sm:$0xff]  ;;  %v2664_v11 = vld [vmem:[#allocation12 + $0x48] sm:$0xff] }
  0xaa   :  { %3303 = vst [vmem:[#allocation123_spill] sm:$0xff] %v2660_v8  ;;  %3304 = vst [vmem:[#allocation124_spill] sm:$0xff] %v2662_v5  ;;  %v2666_v6 = vld [vmem:[#allocation12 + $0x50] sm:$0xff]  ;;  %v2668_v12 = vld [vmem:[#allocation12 + $0x58] sm:$0xff] }
  0xab   :  { %3305 = vst [vmem:[#allocation125_spill] sm:$0xff] %v2664_v11  ;;  %3306 = vst [vmem:[#allocation126_spill] sm:$0xff] %v2666_v6  ;;  %v2670_v9 = vld [vmem:[#allocation12 + $0x60] sm:$0xff]  ;;  %v2672_v3 = vld [vmem:[#allocation12 + $0x68] sm:$0xff] }
  0xac   :  { %3307 = vst [vmem:[#allocation127_spill] sm:$0xff] %v2668_v12  ;;  %3308 = vst [vmem:[#allocation128_spill] sm:$0xff] %v2670_v9  ;;  %v2674_v4 = vld [vmem:[#allocation12 + $0x70] sm:$0xff]  ;;  %v2676_v1 = vld [vmem:[#allocation12 + $0x78] sm:$0xff] }
  0xad   :  { %3309 = vst [vmem:[#allocation129_spill] sm:$0xff] %v2672_v3  ;;  %3310 = vst [vmem:[#allocation130_spill] sm:$0xff] %v2674_v4  ;;  %v2678_v7 = vld [vmem:[#allocation12 + $0x80] sm:$0xff]  ;;  %v2680_v2 = vld [vmem:[#allocation12 + $0x88] sm:$0xff] }
  0xae   :  { %3311 = vst [vmem:[#allocation131_spill] sm:$0xff] %v2676_v1  ;;  %3312 = vst [vmem:[#allocation132_spill] sm:$0xff] %v2678_v7  ;;  %v2682_v8 = vld [vmem:[#allocation12 + $0x90] sm:$0xff]  ;;  %v2684_v5 = vld [vmem:[#allocation12 + $0x98] sm:$0xff] }
  0xaf   :  { %3313 = vst [vmem:[#allocation133_spill] sm:$0xff] %v2680_v2  ;;  %3314 = vst [vmem:[#allocation134_spill] sm:$0xff] %v2682_v8  ;;  %v2686_v11 = vld [vmem:[#allocation12 + $0xa0] sm:$0xff]  ;;  %v2688_v6 = vld [vmem:[#allocation12 + $0xa8] sm:$0xff] }
  0xb0   :  { %3315 = vst [vmem:[#allocation135_spill] sm:$0xff] %v2684_v5  ;;  %3316 = vst [vmem:[#allocation136_spill] sm:$0xff] %v2686_v11  ;;  %v2690_v12 = vld [vmem:[#allocation12 + $0xb0] sm:$0xff]  ;;  %v2692_v9 = vld [vmem:[#allocation12 + $0xb8] sm:$0xff] }
  0xb1   :  { %3317 = vst [vmem:[#allocation137_spill] sm:$0xff] %v2688_v6  ;;  %3318 = vst [vmem:[#allocation138_spill] sm:$0xff] %v2690_v12  ;;  %v2694_v3 = vld [vmem:[#allocation12 + $0xc0] sm:$0xff]  ;;  %v2696_v4 = vld [vmem:[#allocation12 + $0xc8] sm:$0xff] }
  0xb2   :  { %3319 = vst [vmem:[#allocation139_spill] sm:$0xff] %v2692_v9  ;;  %3320 = vst [vmem:[#allocation140_spill] sm:$0xff] %v2694_v3  ;;  %v2698_v1 = vld [vmem:[#allocation12 + $0xd0] sm:$0xff]  ;;  %v2700_v7 = vld [vmem:[#allocation12 + $0xd8] sm:$0xff] }
  0xb3   :  { %3321 = vst [vmem:[#allocation141_spill] sm:$0xff] %v2696_v4  ;;  %3322 = vst [vmem:[#allocation142_spill] sm:$0xff] %v2698_v1  ;;  %v2702_v2 = vld [vmem:[#allocation12 + $0xe0] sm:$0xff]  ;;  %v2704_v8 = vld [vmem:[#allocation12 + $0xe8] sm:$0xff] }
  0xb4   :  { %3323 = vst [vmem:[#allocation143_spill] sm:$0xff] %v2700_v7  ;;  %3324 = vst [vmem:[#allocation144_spill] sm:$0xff] %v2702_v2  ;;  %v2706_v5 = vld [vmem:[#allocation12 + $0xf0] sm:$0xff]  ;;  %v2708_v11 = vld [vmem:[#allocation12 + $0xf8] sm:$0xff] }
  0xb5   :  { %3325 = vst [vmem:[#allocation145_spill] sm:$0xff] %v2704_v8  ;;  %3326 = vst [vmem:[#allocation146_spill] sm:$0xff] %v2706_v5  ;;  %v2710_v6 = vld [vmem:[#allocation12 + $0x100] sm:$0xff]  ;;  %v2712_v12 = vld [vmem:[#allocation12 + $0x108] sm:$0xff] }
  0xb6   :  { %3327 = vst [vmem:[#allocation147_spill] sm:$0xff] %v2708_v11  ;;  %3328 = vst [vmem:[#allocation148_spill] sm:$0xff] %v2710_v6  ;;  %v2714_v9 = vld [vmem:[#allocation12 + $0x110] sm:$0xff]  ;;  %v2716_v3 = vld [vmem:[#allocation12 + $0x118] sm:$0xff] }
  0xb7   :  { %3329 = vst [vmem:[#allocation149_spill] sm:$0xff] %v2712_v12  ;;  %3330 = vst [vmem:[#allocation150_spill] sm:$0xff] %v2714_v9  ;;  %v2718_v4 = vld [vmem:[#allocation12 + $0x120] sm:$0xff]  ;;  %v2720_v1 = vld [vmem:[#allocation12 + $0x128] sm:$0xff] }
  0xb8   :  { %3331 = vst [vmem:[#allocation151_spill] sm:$0xff] %v2716_v3  ;;  %3332 = vst [vmem:[#allocation152_spill] sm:$0xff] %v2718_v4  ;;  %v2722_v7 = vld [vmem:[#allocation12 + $0x130] sm:$0xff]  ;;  %v2724_v2 = vld [vmem:[#allocation12 + $0x138] sm:$0xff] }
  0xb9   :  { %3333 = vst [vmem:[#allocation153_spill] sm:$0xff] %v2720_v1  ;;  %3334 = vst [vmem:[#allocation154_spill] sm:$0xff] %v2722_v7  ;;  %v2726_v8 = vld [vmem:[#allocation12 + $0x140] sm:$0xff]  ;;  %v2728_v5 = vld [vmem:[#allocation12 + $0x148] sm:$0xff] }
  0xba   :  { %3335 = vst [vmem:[#allocation155_spill] sm:$0xff] %v2724_v2  ;;  %3336 = vst [vmem:[#allocation156_spill] sm:$0xff] %v2726_v8  ;;  %v2730_v11 = vld [vmem:[#allocation12 + $0x150] sm:$0xff]  ;;  %v2732_v6 = vld [vmem:[#allocation12 + $0x158] sm:$0xff] }
  0xbb   :  { %3337 = vst [vmem:[#allocation157_spill] sm:$0xff] %v2728_v5  ;;  %3338 = vst [vmem:[#allocation158_spill] sm:$0xff] %v2730_v11  ;;  %v2734_v12 = vld [vmem:[#allocation12 + $0x160] sm:$0xff]  ;;  %v2736_v9 = vld [vmem:[#allocation12 + $0x168] sm:$0xff] }
  0xbc   :  { %3339 = vst [vmem:[#allocation159_spill] sm:$0xff] %v2732_v6  ;;  %3340 = vst [vmem:[#allocation160_spill] sm:$0xff] %v2734_v12  ;;  %v2738_v3 = vld [vmem:[#allocation12 + $0x170] sm:$0xff]  ;;  %v2740_v4 = vld [vmem:[#allocation12 + $0x178] sm:$0xff] }
  0xbd   :  { %3341 = vst [vmem:[#allocation161_spill] sm:$0xff] %v2736_v9  ;;  %3342 = vst [vmem:[#allocation162_spill] sm:$0xff] %v2738_v3  ;;  %v2742_v1 = vld [vmem:[#allocation12 + $0x180] sm:$0xff]  ;;  %v2744_v7 = vld [vmem:[#allocation12 + $0x188] sm:$0xff] }
  0xbe   :  { %3343 = vst [vmem:[#allocation163_spill] sm:$0xff] %v2740_v4  ;;  %3344 = vst [vmem:[#allocation164_spill] sm:$0xff] %v2742_v1  ;;  %v2746_v2 = vld [vmem:[#allocation12 + $0x190] sm:$0xff]  ;;  %v2748_v8 = vld [vmem:[#allocation12 + $0x198] sm:$0xff] }
  0xbf   :  { %3345 = vst [vmem:[#allocation165_spill] sm:$0xff] %v2744_v7  ;;  %3346 = vst [vmem:[#allocation166_spill] sm:$0xff] %v2746_v2  ;;  %v2750_v5 = vld [vmem:[#allocation12 + $0x1a0] sm:$0xff]  ;;  %v2752_v11 = vld [vmem:[#allocation12 + $0x1a8] sm:$0xff] }
  0xc0   :  { %3347 = vst [vmem:[#allocation167_spill] sm:$0xff] %v2748_v8  ;;  %3348 = vst [vmem:[#allocation168_spill] sm:$0xff] %v2750_v5  ;;  %v2754_v6 = vld [vmem:[#allocation12 + $0x1b0] sm:$0xff]  ;;  %v2756_v12 = vld [vmem:[#allocation12 + $0x1b8] sm:$0xff] }
  0xc1   :  { %3349 = vst [vmem:[#allocation169_spill] sm:$0xff] %v2752_v11  ;;  %3350 = vst [vmem:[#allocation170_spill] sm:$0xff] %v2754_v6  ;;  %v2758_v9 = vld [vmem:[#allocation12 + $0x1c0] sm:$0xff]  ;;  %v2760_v3 = vld [vmem:[#allocation12 + $0x1c8] sm:$0xff] }
  0xc2   :  { %3351 = vst [vmem:[#allocation171_spill] sm:$0xff] %v2756_v12  ;;  %3352 = vst [vmem:[#allocation172_spill] sm:$0xff] %v2758_v9  ;;  %v2762_v4 = vld [vmem:[#allocation12 + $0x1d0] sm:$0xff]  ;;  %v2764_v1 = vld [vmem:[#allocation12 + $0x1d8] sm:$0xff] }
  0xc3   :  { %3353 = vst [vmem:[#allocation173_spill] sm:$0xff] %v2760_v3  ;;  %3354 = vst [vmem:[#allocation174_spill] sm:$0xff] %v2762_v4  ;;  %v2766_v7 = vld [vmem:[#allocation12 + $0x1e0] sm:$0xff]  ;;  %v2768_v2 = vld [vmem:[#allocation12 + $0x1e8] sm:$0xff] }
  0xc4   :  { %3355 = vst [vmem:[#allocation175_spill] sm:$0xff] %v2764_v1  ;;  %3356 = vst [vmem:[#allocation176_spill] sm:$0xff] %v2766_v7  ;;  %v2770_v8 = vld [vmem:[#allocation12 + $0x1f0] sm:$0xff]  ;;  %v2772_v5 = vld [vmem:[#allocation12 + $0x1f8] sm:$0xff] }
  0xc5   :  { %3357 = vst [vmem:[#allocation177_spill] sm:$0xff] %v2768_v2  ;;  %3358 = vst [vmem:[#allocation178_spill] sm:$0xff] %v2770_v8  ;;  %v2777_v6 = vld [vmem:[%s3187_s7] sm:$0xf]  ;;  %v248_v12 = vld [vmem:[#allocation8 + $0x1e8] sm:$0xff] }
  0xc6   :  { %3359 = vst [vmem:[#allocation179_spill] sm:$0xff] %v2772_v5  ;;  %3360 = vst [vmem:[#allocation180_spill] sm:$0xff] %v2777_v6  ;;  %v250_v11 = vld [vmem:[#allocation8 + $0x1f8] sm:$0xff]  ;;  %273 = vmatprep.subr.mxu0 %v248_v12  ;;  %v247_v4 = vld [vmem:[#allocation8 + $0x1e0] sm:$0xff] }
  0xc7   :  { %434 = vmatprep.subr.mxu1 %v250_v11  ;;  %v249_v9 = vld [vmem:[#allocation8 + $0x1f0] sm:$0xff]  ;;  %v244_v1 = vld [vmem:[#allocation8 + $0x1c8] sm:$0xff]  ;;  %274 = vmatpush1.msra.mxu0 %v247_v4  ;;  %v246_v3 = vld [vmem:[#allocation8 + $0x1d8] sm:$0xff] }
  0xc8   :  { %435 = vmatpush1.msra.mxu1 %v249_v9  ;;  %v243_v7 = vld [vmem:[#allocation8 + $0x1c0] sm:$0xff]  ;;  %v245_v2 = vld [vmem:[#allocation8 + $0x1d0] sm:$0xff]  ;;  %275 = vmatprep.subr.mxu0 %v244_v1  ;;  %v240_v8 = vld [vmem:[#allocation8 + $0x1a8] sm:$0xff] }
  0xc9   :  { %436 = vmatprep.subr.mxu1 %v246_v3  ;;  %v242_v5 = vld [vmem:[#allocation8 + $0x1b8] sm:$0xff]  ;;  %v239_v15 = vld [vmem:[#allocation8 + $0x1a0] sm:$0xff]  ;;  %276 = vmatpush1.msra.mxu0 %v243_v7  ;;  %v241_v6 = vld [vmem:[#allocation8 + $0x1b0] sm:$0xff] }
  0xca   :  { %437 = vmatpush1.msra.mxu1 %v245_v2  ;;  %v236_v10 = vld [vmem:[#allocation8 + $0x188] sm:$0xff]  ;;  %v238_v16 = vld [vmem:[#allocation8 + $0x198] sm:$0xff]  ;;  %277 = vmatprep.subr.mxu0 %v240_v8  ;;  %v235_v11 = vld [vmem:[#allocation8 + $0x180] sm:$0xff] }
  0xcb   :  { %438 = vmatprep.subr.mxu1 %v242_v5  ;;  %v237_v12 = vld [vmem:[#allocation8 + $0x190] sm:$0xff]  ;;  %278 = vmatpush1.msra.mxu0 %v239_v15  ;;  %v232_v4 = vld [vmem:[#allocation8 + $0x168] sm:$0xff]  ;;  %v234_v9 = vld [vmem:[#allocation8 + $0x178] sm:$0xff] }
  0xcc   :  { %439 = vmatpush1.msra.mxu1 %v241_v6  ;;  %279 = vmatprep.subr.mxu0 %v236_v10  ;;  %v231_v1 = vld [vmem:[#allocation8 + $0x160] sm:$0xff]  ;;  %v233_v3 = vld [vmem:[#allocation8 + $0x170] sm:$0xff]  ;;  %v228_v13 = vld [vmem:[#allocation8 + $0x148] sm:$0xff] }
  0xcd   :  { %440 = vmatprep.subr.mxu1 %v238_v16  ;;  %280 = vmatpush1.msra.mxu0 %v235_v11  ;;  %v230_v7 = vld [vmem:[#allocation8 + $0x158] sm:$0xff]  ;;  %v227_v2 = vld [vmem:[#allocation8 + $0x140] sm:$0xff]  ;;  %v229_v19 = vld [vmem:[#allocation8 + $0x150] sm:$0xff] }
  0xce   :  { %441 = vmatpush1.msra.mxu1 %v237_v12  ;;  %281 = vmatprep.subr.mxu0 %v232_v4  ;;  %v224_v5 = vld [vmem:[#allocation8 + $0x128] sm:$0xff]  ;;  %v226_v8 = vld [vmem:[#allocation8 + $0x138] sm:$0xff]  ;;  %v223_v6 = vld [vmem:[#allocation8 + $0x120] sm:$0xff] }
  0xcf   :  { %442 = vmatprep.subr.mxu1 %v234_v9  ;;  %282 = vmatpush1.msra.mxu0 %v231_v1  ;;  %v225_v15 = vld [vmem:[#allocation8 + $0x130] sm:$0xff]  ;;  %v220_v10 = vld [vmem:[#allocation8 + $0x108] sm:$0xff]  ;;  %v222_v16 = vld [vmem:[#allocation8 + $0x118] sm:$0xff] }
  0xd0   :  { %443 = vmatpush1.msra.mxu1 %v233_v3  ;;  %283 = vmatprep.subr.mxu0 %v228_v13  ;;  %v219_v11 = vld [vmem:[#allocation8 + $0x100] sm:$0xff]  ;;  %v221_v12 = vld [vmem:[#allocation8 + $0x110] sm:$0xff]  ;;  %v216_v4 = vld [vmem:[#allocation8 + $0xe8] sm:$0xff] }
  0xd1   :  { %444 = vmatprep.subr.mxu1 %v230_v7  ;;  %284 = vmatpush1.msra.mxu0 %v227_v2  ;;  %v218_v9 = vld [vmem:[#allocation8 + $0xf8] sm:$0xff]  ;;  %v215_v1 = vld [vmem:[#allocation8 + $0xe0] sm:$0xff]  ;;  %v217_v3 = vld [vmem:[#allocation8 + $0xf0] sm:$0xff] }
  0xd2   :  { %445 = vmatpush1.msra.mxu1 %v229_v19  ;;  %285 = vmatprep.subr.mxu0 %v224_v5  ;;  %v212_v13 = vld [vmem:[#allocation8 + $0xc8] sm:$0xff]  ;;  %v214_v7 = vld [vmem:[#allocation8 + $0xd8] sm:$0xff]  ;;  %v211_v19 = vld [vmem:[#allocation8 + $0xc0] sm:$0xff] }
  0xd3   :  { %446 = vmatprep.subr.mxu1 %v226_v8  ;;  %286 = vmatpush1.msra.mxu0 %v223_v6  ;;  %v213_v2 = vld [vmem:[#allocation8 + $0xd0] sm:$0xff]  ;;  %v208_v5 = vld [vmem:[#allocation8 + $0xa8] sm:$0xff]  ;;  %v210_v8 = vld [vmem:[#allocation8 + $0xb8] sm:$0xff] }
  0xd4   :  { %447 = vmatpush1.msra.mxu1 %v225_v15  ;;  %287 = vmatprep.subr.mxu0 %v220_v10  ;;  %v207_v6 = vld [vmem:[#allocation8 + $0xa0] sm:$0xff]  ;;  %v209_v15 = vld [vmem:[#allocation8 + $0xb0] sm:$0xff]  ;;  %v204_v10 = vld [vmem:[#allocation8 + $0x88] sm:$0xff] }
  0xd5   :  { %448 = vmatprep.subr.mxu1 %v222_v16  ;;  %288 = vmatpush1.msra.mxu0 %v219_v11  ;;  %v206_v16 = vld [vmem:[#allocation8 + $0x98] sm:$0xff]  ;;  %v203_v11 = vld [vmem:[#allocation8 + $0x80] sm:$0xff] }
  0xd6   :  { %449 = vmatpush1.msra.mxu1 %v221_v12  ;;  %289 = vmatprep.subr.mxu0 %v216_v4  ;;  %v205_v12 = vld [vmem:[#allocation8 + $0x90] sm:$0xff]  ;;  %v200_v4 = vld [vmem:[#allocation8 + $0x68] sm:$0xff] }
  0xd7   :  { %450 = vmatprep.subr.mxu1 %v218_v9  ;;  %290 = vmatpush1.msra.mxu0 %v215_v1  ;;  %v202_v9 = vld [vmem:[#allocation8 + $0x78] sm:$0xff]  ;;  %v199_v1 = vld [vmem:[#allocation8 + $0x60] sm:$0xff] }
  0xd8   :  { %451 = vmatpush1.msra.mxu1 %v217_v3  ;;  %291 = vmatprep.subr.mxu0 %v212_v13  ;;  %v201_v3 = vld [vmem:[#allocation8 + $0x70] sm:$0xff]  ;;  %v196_v13 = vld [vmem:[#allocation8 + $0x48] sm:$0xff] }
  0xd9   :  { %452 = vmatprep.subr.mxu1 %v214_v7  ;;  %292 = vmatpush1.msra.mxu0 %v211_v19  ;;  %v198_v7 = vld [vmem:[#allocation8 + $0x58] sm:$0xff]  ;;  %v195_v19 = vld [vmem:[#allocation8 + $0x40] sm:$0xff] }
  0xda   :  { %453 = vmatpush1.msra.mxu1 %v213_v2  ;;  %293 = vmatprep.subr.mxu0 %v208_v5  ;;  %v197_v2 = vld [vmem:[#allocation8 + $0x50] sm:$0xff]  ;;  %v192_v5 = vld [vmem:[#allocation8 + $0x28] sm:$0xff] }
  0xdb   :  { %454 = vmatprep.subr.mxu1 %v210_v8  ;;  %294 = vmatpush1.msra.mxu0 %v207_v6  ;;  %v194_v8 = vld [vmem:[#allocation8 + $0x38] sm:$0xff]  ;;  %v191_v6 = vld [vmem:[#allocation8 + $0x20] sm:$0xff] }
  0xdc   :  { %455 = vmatpush1.msra.mxu1 %v209_v15  ;;  %295 = vmatprep.subr.mxu0 %v204_v10  ;;  %v193_v15 = vld [vmem:[#allocation8 + $0x30] sm:$0xff]  ;;  %v188_v10 = vld [vmem:[#allocation8 + $0x8] sm:$0xff] }
  0xdd   :  { %456 = vmatprep.subr.mxu1 %v206_v16  ;;  %296 = vmatpush1.msra.mxu0 %v203_v11  ;;  %v190_v16 = vld [vmem:[#allocation8 + $0x18] sm:$0xff]  ;;  %v187_v11 = vld [vmem:[#allocation8] sm:$0xff] }
  0xde   :  { %457 = vmatpush1.msra.mxu1 %v205_v12  ;;  %297 = vmatprep.subr.mxu0 %v200_v4  ;;  %v189_v12 = vld [vmem:[#allocation8 + $0x10] sm:$0xff] }
  0xdf   :  { %458 = vmatprep.subr.mxu1 %v202_v9  ;;  %298 = vmatpush1.msra.mxu0 %v199_v1  ;;  %v171_v4 = vld [vmem:[#allocation3] sm:$0xff]  ;;  %v3361_v9 = vmov 0.0   ;;  %v172_v1 = vld [vmem:[#allocation3 + $0x8] sm:$0xff] }
  0xe0   :  { %459 = vmatpush1.msra.mxu1 %v201_v3  ;;  %299 = vmatprep.subr.mxu0 %v196_v13  ;;  %v173_v3 = vld [vmem:[#allocation3 + $0x10] sm:$0xff]  ;;  %v174_v13 = vld [vmem:[#allocation3 + $0x18] sm:$0xff] }
  0xe1   :  { %460 = vmatprep.subr.mxu1 %v198_v7  ;;  %300 = vmatpush1.msra.mxu0 %v195_v19  ;;  %v175_v7 = vld [vmem:[#allocation3 + $0x20] sm:$0xff]  ;;  %v176_v19 = vld [vmem:[#allocation3 + $0x28] sm:$0xff] }
  0xe2   :  { %461 = vmatpush1.msra.mxu1 %v197_v2  ;;  %301 = vmatprep.subr.mxu0 %v192_v5  ;;  %v177_v2 = vld [vmem:[#allocation3 + $0x30] sm:$0xff]  ;;  %v178_v5 = vld [vmem:[#allocation3 + $0x38] sm:$0xff] }
  0xe3   :  { %462 = vmatprep.subr.mxu1 %v194_v8  ;;  %302 = vmatpush1.msra.mxu0 %v191_v6  ;;  %v179_v8 = vld [vmem:[#allocation3 + $0x40] sm:$0xff]  ;;  %v180_v6 = vld [vmem:[#allocation3 + $0x48] sm:$0xff] }
  0xe4   :  { %463 = vmatpush1.msra.mxu1 %v193_v15  ;;  %303 = vmatprep.subr.mxu0 %v188_v10  ;;  %v181_v15 = vld [vmem:[#allocation3 + $0x50] sm:$0xff]  ;;  %v182_v10 = vld [vmem:[#allocation3 + $0x58] sm:$0xff] }
  0xe5   :  { %464 = vmatprep.subr.mxu1 %v190_v16  ;;  %304 = vmatpush1.msra.mxu0 %v187_v11  ;;  %v183_v16 = vld [vmem:[#allocation3 + $0x60] sm:$0xff]  ;;  %v184_v11 = vld [vmem:[#allocation3 + $0x68] sm:$0xff] }
  0xe6   :  { %465 = vmatpush1.msra.mxu1 %v189_v12  ;;  %338 = vmatmul.mubr.f32.vlgmr.msra.gmra.mxu0 %v171_v4  ;;  %v185_v12 = vld [vmem:[#allocation3 + $0x70] sm:$0xff] }
  0xe7   :  { %499 = vmatmul.mubr.f32.vlgmr.msra.gmra.mxu1 %v171_v4  ;;  %343 = vmatprep.mubr.f32.mxu0 %v3361_v9  ;;  %v186_v4 = vld [vmem:[#allocation3 + $0x78] sm:$0xff] }
  0xe8   :  { %504 = vmatprep.mubr.f32.mxu1 %v3361_v9 }
  0xea   :  { %344 = vmatmul.mubr.f32.gmra.mxu0 %v172_v1 }
  0xeb   :  { %505 = vmatmul.mubr.f32.gmra.mxu1 %v172_v1  ;;  %349 = vmatprep.mubr.f32.mxu0 %v3361_v9  ;;  %v253_v1 = vlaneseq }
  0xec   :  { %510 = vmatprep.mubr.f32.mxu1 %v3361_v9 }
  0xee   :  { %350 = vmatmul.mubr.f32.gmra.mxu0 %v173_v3 }
  0xef   :  { %511 = vmatmul.mubr.f32.gmra.mxu1 %v173_v3  ;;  %355 = vmatprep.mubr.f32.mxu0 %v3361_v9  ;;  %v2809_v3 = vshrl.u32 %v253_v1, 7 }
  0xf0   :  { %516 = vmatprep.mubr.f32.mxu1 %v3361_v9 }
  0xf1   :  { %3362 = vst [vmem:[#allocation181_spill] sm:$0xff] %v2809_v3 }
  0xf2   :  { %356 = vmatmul.mubr.f32.gmra.mxu0 %v174_v13 }
  0xf3   :  { %517 = vmatmul.mubr.f32.gmra.mxu1 %v174_v13  ;;  %361 = vmatprep.mubr.f32.mxu0 %v3361_v9  ;;  %v3200_v13 = vsub.s32 0, %v2809_v3 }
  0xf4   :  { %522 = vmatprep.mubr.f32.mxu1 %v3361_v9 }
  0xf6   :  { %362 = vmatmul.mubr.f32.gmra.mxu0 %v175_v7 }
  0xf7   :  { %523 = vmatmul.mubr.f32.gmra.mxu1 %v175_v7  ;;  %367 = vmatprep.mubr.f32.mxu0 %v3361_v9  ;;  %v3199_v7 = vsub.s32 2, %v2809_v3 }
  0xf8   :  { %528 = vmatprep.mubr.f32.mxu1 %v3361_v9 }
  0xfa   :  { %368 = vmatmul.mubr.f32.gmra.mxu0 %v176_v19 }
  0xfb   :  { %529 = vmatmul.mubr.f32.gmra.mxu1 %v176_v19  ;;  %373 = vmatprep.mubr.f32.mxu0 %v3361_v9  ;;  %v251_v19 = vld [vmem:[%s3184_s4] sm:$0xf]  ;;  %s2906_s4 = smov 0  }
  0xfc   :  { %534 = vmatprep.mubr.f32.mxu1 %v3361_v9 }
  0xfe   :  { %374 = vmatmul.mubr.f32.gmra.mxu0 %v177_v2 }
  0xff   :  { %535 = vmatmul.mubr.f32.gmra.mxu1 %v177_v2  ;;  %379 = vmatprep.mubr.f32.mxu0 %v3361_v9  ;;  %v3201_v2 = vsub.s32 1, %v2809_v3 }
 0x100   :  { %540 = vmatprep.mubr.f32.mxu1 %v3361_v9 }
 0x102   :  { %380 = vmatmul.mubr.f32.gmra.mxu0 %v178_v5 }
 0x103   :  { %541 = vmatmul.mubr.f32.gmra.mxu1 %v178_v5  ;;  %385 = vmatprep.mubr.f32.mxu0 %v3361_v9  ;;  %v3202_v5 = vsub.s32 3, %v2809_v3 }
 0x104   :  { %546 = vmatprep.mubr.f32.mxu1 %v3361_v9 }
 0x106   :  { %386 = vmatmul.mubr.f32.gmra.mxu0 %v179_v8 }
 0x107   :  { %547 = vmatmul.mubr.f32.gmra.mxu1 %v179_v8  ;;  %391 = vmatprep.mubr.f32.mxu0 %v3361_v9  ;;  %v2824_v8 = vrot.slane %v251_v19, %v3199_v7 }
 0x108   :  { %552 = vmatprep.mubr.f32.mxu1 %v3361_v9 }
 0x10a   :  { %392 = vmatmul.mubr.f32.gmra.mxu0 %v180_v6 }
 0x10b   :  { %553 = vmatmul.mubr.f32.gmra.mxu1 %v180_v6  ;;  %397 = vmatprep.mubr.f32.mxu0 %v3361_v9  ;;  %v2828_v6 = vrot.slane %v251_v19, %v3201_v2 }
 0x10c   :  { %558 = vmatprep.mubr.f32.mxu1 %v3361_v9 }
 0x10e   :  { %398 = vmatmul.mubr.f32.gmra.mxu0 %v181_v15 }
 0x10f   :  { %559 = vmatmul.mubr.f32.gmra.mxu1 %v181_v15  ;;  %403 = vmatprep.mubr.f32.mxu0 %v3361_v9  ;;  %v2832_v15 = vrot.slane %v251_v19, %v3202_v5 }
 0x110   :  { %564 = vmatprep.mubr.f32.mxu1 %v3361_v9 }
 0x112   :  { %404 = vmatmul.mubr.f32.gmra.mxu0 %v182_v10 }
 0x113   :  { %565 = vmatmul.mubr.f32.gmra.mxu1 %v182_v10  ;;  %409 = vmatprep.mubr.f32.mxu0 %v3361_v9 }
 0x114   :  { %570 = vmatprep.mubr.f32.mxu1 %v3361_v9 }
 0x116   :  { %410 = vmatmul.mubr.f32.gmra.mxu0 %v183_v16 }
 0x117   :  { %571 = vmatmul.mubr.f32.gmra.mxu1 %v183_v16  ;;  %415 = vmatprep.mubr.f32.mxu0 %v3361_v9 }
 0x118   :  { %576 = vmatprep.mubr.f32.mxu1 %v3361_v9 }
 0x11a   :  { %416 = vmatmul.mubr.f32.gmra.mxu0 %v184_v11 }
 0x11b   :  { %577 = vmatmul.mubr.f32.gmra.mxu1 %v184_v11  ;;  %421 = vmatprep.mubr.f32.mxu0 %v3361_v9 }
 0x11c   :  { %582 = vmatprep.mubr.f32.mxu1 %v3361_v9 }
 0x11e   :  { %422 = vmatmul.mubr.f32.gmra.mxu0 %v185_v12 }
 0x11f   :  { %583 = vmatmul.mubr.f32.gmra.mxu1 %v185_v12  ;;  %427 = vmatprep.mubr.f32.mxu0 %v3361_v9 }
 0x120   :  { %588 = vmatprep.mubr.f32.mxu1 %v3361_v9  ;;  %v2820_v9 = vrot.slane %v251_v19, %v3200_v13 }
 0x122   :  { %428 = vmatmul.mubr.f32.gmra.mxu0 %v186_v4 }
 0x123   :  { %589 = vmatmul.mubr.f32.gmra.mxu1 %v186_v4 }
 0x1a6   :  { %v339_v10 = vpop.f32.mrf.mxu0 }
 0x1a7   :  { %v500_v16 = vpop.f32.mrf.mxu1  ;;  %v340_v11 = vadd.f32 %v339_v10, %v2820_v9 }
 0x1a8   :  { %v501_v12 = vadd.f32 %v500_v16, %v2824_v8  ;;  %v341_v4 = vpop.f32.mrf.mxu0 }
 0x1a9   :  { %v502_v1 = vpop.f32.mrf.mxu1  ;;  %595 = vst [vmem:[#allocation2] sm:$0xff] %v340_v11  ;;  %v342_v7 = vadd.f32 %v341_v4, %v2828_v6 }
 0x1aa   :  { %597 = vst [vmem:[#allocation2 + $0x10] sm:$0xff] %v501_v12  ;;  %v503_v13 = vadd.f32 %v502_v1, %v2832_v15  ;;  %v345_v2 = vpop.f32.mrf.mxu0 }
 0x1ab   :  { %v506_v14 = vpop.f32.mrf.mxu1  ;;  %596 = vst [vmem:[#allocation2 + $0x8] sm:$0xff] %v342_v7  ;;  %v346_v19 = vadd.f32 %v345_v2, %v2820_v9 }
 0x1ac   :  { %598 = vst [vmem:[#allocation2 + $0x18] sm:$0xff] %v503_v13  ;;  %v507_v5 = vadd.f32 %v506_v14, %v2824_v8  ;;  %v347_v3 = vpop.f32.mrf.mxu0 }
 0x1ad   :  { %v508_v10 = vpop.f32.mrf.mxu1  ;;  %599 = vst [vmem:[#allocation2 + $0x20] sm:$0xff] %v346_v19  ;;  %v348_v16 = vadd.f32 %v347_v3, %v2828_v6 }
 0x1ae   :  { %601 = vst [vmem:[#allocation2 + $0x30] sm:$0xff] %v507_v5  ;;  %v509_v11 = vadd.f32 %v508_v10, %v2832_v15  ;;  %v351_v12 = vpop.f32.mrf.mxu0 }
 0x1af   :  { %v512_v4 = vpop.f32.mrf.mxu1  ;;  %600 = vst [vmem:[#allocation2 + $0x28] sm:$0xff] %v348_v16  ;;  %v352_v1 = vadd.f32 %v351_v12, %v2820_v9 }
 0x1b0   :  { %602 = vst [vmem:[#allocation2 + $0x38] sm:$0xff] %v509_v11  ;;  %v513_v13 = vadd.f32 %v512_v4, %v2824_v8  ;;  %v353_v7 = vpop.f32.mrf.mxu0 }
 0x1b1   :  { %v514_v2 = vpop.f32.mrf.mxu1  ;;  %603 = vst [vmem:[#allocation2 + $0x40] sm:$0xff] %v352_v1  ;;  %v354_v14 = vadd.f32 %v353_v7, %v2828_v6 }
 0x1b2   :  { %605 = vst [vmem:[#allocation2 + $0x50] sm:$0xff] %v513_v13  ;;  %v515_v5 = vadd.f32 %v514_v2, %v2832_v15  ;;  %v357_v19 = vpop.f32.mrf.mxu0 }
 0x1b3   :  { %v518_v3 = vpop.f32.mrf.mxu1  ;;  %604 = vst [vmem:[#allocation2 + $0x48] sm:$0xff] %v354_v14  ;;  %v358_v10 = vadd.f32 %v357_v19, %v2820_v9 }
 0x1b4   :  { %606 = vst [vmem:[#allocation2 + $0x58] sm:$0xff] %v515_v5  ;;  %v519_v16 = vadd.f32 %v518_v3, %v2824_v8  ;;  %v359_v11 = vpop.f32.mrf.mxu0 }
 0x1b5   :  { %v520_v12 = vpop.f32.mrf.mxu1  ;;  %607 = vst [vmem:[#allocation2 + $0x60] sm:$0xff] %v358_v10  ;;  %v360_v4 = vadd.f32 %v359_v11, %v2828_v6 }
 0x1b6   :  { %609 = vst [vmem:[#allocation2 + $0x70] sm:$0xff] %v519_v16  ;;  %v521_v1 = vadd.f32 %v520_v12, %v2832_v15  ;;  %v363_v13 = vpop.f32.mrf.mxu0 }
 0x1b7   :  { %v524_v7 = vpop.f32.mrf.mxu1  ;;  %608 = vst [vmem:[#allocation2 + $0x68] sm:$0xff] %v360_v4  ;;  %v364_v2 = vadd.f32 %v363_v13, %v2820_v9 }
 0x1b8   :  { %610 = vst [vmem:[#allocation2 + $0x78] sm:$0xff] %v521_v1  ;;  %v525_v14 = vadd.f32 %v524_v7, %v2824_v8  ;;  %v365_v5 = vpop.f32.mrf.mxu0 }
 0x1b9   :  { %v526_v19 = vpop.f32.mrf.mxu1  ;;  %611 = vst [vmem:[#allocation2 + $0x80] sm:$0xff] %v364_v2  ;;  %v366_v3 = vadd.f32 %v365_v5, %v2828_v6 }
 0x1ba   :  { %613 = vst [vmem:[#allocation2 + $0x90] sm:$0xff] %v525_v14  ;;  %v527_v10 = vadd.f32 %v526_v19, %v2832_v15  ;;  %v369_v16 = vpop.f32.mrf.mxu0 }
 0x1bb   :  { %v530_v11 = vpop.f32.mrf.mxu1  ;;  %612 = vst [vmem:[#allocation2 + $0x88] sm:$0xff] %v366_v3  ;;  %v370_v12 = vadd.f32 %v369_v16, %v2820_v9 }
 0x1bc   :  { %614 = vst [vmem:[#allocation2 + $0x98] sm:$0xff] %v527_v10  ;;  %v531_v4 = vadd.f32 %v530_v11, %v2824_v8  ;;  %v371_v1 = vpop.f32.mrf.mxu0 }
 0x1bd   :  { %v532_v13 = vpop.f32.mrf.mxu1  ;;  %615 = vst [vmem:[#allocation2 + $0xa0] sm:$0xff] %v370_v12  ;;  %v372_v7 = vadd.f32 %v371_v1, %v2828_v6 }
 0x1be   :  { %617 = vst [vmem:[#allocation2 + $0xb0] sm:$0xff] %v531_v4  ;;  %v533_v2 = vadd.f32 %v532_v13, %v2832_v15  ;;  %v375_v14 = vpop.f32.mrf.mxu0 }
 0x1bf   :  { %v536_v5 = vpop.f32.mrf.mxu1  ;;  %616 = vst [vmem:[#allocation2 + $0xa8] sm:$0xff] %v372_v7  ;;  %v376_v19 = vadd.f32 %v375_v14, %v2820_v9 }
 0x1c0   :  { %618 = vst [vmem:[#allocation2 + $0xb8] sm:$0xff] %v533_v2  ;;  %v537_v3 = vadd.f32 %v536_v5, %v2824_v8  ;;  %v377_v10 = vpop.f32.mrf.mxu0 }
 0x1c1   :  { %v538_v16 = vpop.f32.mrf.mxu1  ;;  %619 = vst [vmem:[#allocation2 + $0xc0] sm:$0xff] %v376_v19  ;;  %v378_v11 = vadd.f32 %v377_v10, %v2828_v6 }
 0x1c2   :  { %621 = vst [vmem:[#allocation2 + $0xd0] sm:$0xff] %v537_v3  ;;  %v539_v12 = vadd.f32 %v538_v16, %v2832_v15  ;;  %v381_v4 = vpop.f32.mrf.mxu0 }
 0x1c3   :  { %v542_v1 = vpop.f32.mrf.mxu1  ;;  %620 = vst [vmem:[#allocation2 + $0xc8] sm:$0xff] %v378_v11  ;;  %v382_v13 = vadd.f32 %v381_v4, %v2820_v9 }
 0x1c4   :  { %622 = vst [vmem:[#allocation2 + $0xd8] sm:$0xff] %v539_v12  ;;  %v543_v7 = vadd.f32 %v542_v1, %v2824_v8  ;;  %v383_v2 = vpop.f32.mrf.mxu0 }
 0x1c5   :  { %v544_v14 = vpop.f32.mrf.mxu1  ;;  %623 = vst [vmem:[#allocation2 + $0xe0] sm:$0xff] %v382_v13  ;;  %v384_v5 = vadd.f32 %v383_v2, %v2828_v6 }
 0x1c6   :  { %625 = vst [vmem:[#allocation2 + $0xf0] sm:$0xff] %v543_v7  ;;  %v545_v19 = vadd.f32 %v544_v14, %v2832_v15  ;;  %v387_v3 = vpop.f32.mrf.mxu0 }
 0x1c7   :  { %v548_v10 = vpop.f32.mrf.mxu1  ;;  %624 = vst [vmem:[#allocation2 + $0xe8] sm:$0xff] %v384_v5  ;;  %v388_v16 = vadd.f32 %v387_v3, %v2820_v9 }
 0x1c8   :  { %626 = vst [vmem:[#allocation2 + $0xf8] sm:$0xff] %v545_v19  ;;  %v549_v11 = vadd.f32 %v548_v10, %v2824_v8  ;;  %v389_v12 = vpop.f32.mrf.mxu0 }
 0x1c9   :  { %v550_v4 = vpop.f32.mrf.mxu1  ;;  %627 = vst [vmem:[#allocation2 + $0x100] sm:$0xff] %v388_v16  ;;  %v390_v1 = vadd.f32 %v389_v12, %v2828_v6 }
 0x1ca   :  { %629 = vst [vmem:[#allocation2 + $0x110] sm:$0xff] %v549_v11  ;;  %v551_v13 = vadd.f32 %v550_v4, %v2832_v15  ;;  %v393_v7 = vpop.f32.mrf.mxu0 }
 0x1cb   :  { %v554_v2 = vpop.f32.mrf.mxu1  ;;  %628 = vst [vmem:[#allocation2 + $0x108] sm:$0xff] %v390_v1  ;;  %v394_v14 = vadd.f32 %v393_v7, %v2820_v9 }
 0x1cc   :  { %630 = vst [vmem:[#allocation2 + $0x118] sm:$0xff] %v551_v13  ;;  %v555_v5 = vadd.f32 %v554_v2, %v2824_v8  ;;  %v395_v19 = vpop.f32.mrf.mxu0 }
 0x1cd   :  { %v556_v3 = vpop.f32.mrf.mxu1  ;;  %631 = vst [vmem:[#allocation2 + $0x120] sm:$0xff] %v394_v14  ;;  %v396_v10 = vadd.f32 %v395_v19, %v2828_v6 }
 0x1ce   :  { %633 = vst [vmem:[#allocation2 + $0x130] sm:$0xff] %v555_v5  ;;  %v557_v16 = vadd.f32 %v556_v3, %v2832_v15  ;;  %v399_v11 = vpop.f32.mrf.mxu0 }
 0x1cf   :  { %v560_v12 = vpop.f32.mrf.mxu1  ;;  %632 = vst [vmem:[#allocation2 + $0x128] sm:$0xff] %v396_v10  ;;  %v400_v4 = vadd.f32 %v399_v11, %v2820_v9 }
 0x1d0   :  { %634 = vst [vmem:[#allocation2 + $0x138] sm:$0xff] %v557_v16  ;;  %v561_v1 = vadd.f32 %v560_v12, %v2824_v8  ;;  %v401_v13 = vpop.f32.mrf.mxu0 }
 0x1d1   :  { %v562_v7 = vpop.f32.mrf.mxu1  ;;  %635 = vst [vmem:[#allocation2 + $0x140] sm:$0xff] %v400_v4  ;;  %v402_v2 = vadd.f32 %v401_v13, %v2828_v6 }
 0x1d2   :  { %637 = vst [vmem:[#allocation2 + $0x150] sm:$0xff] %v561_v1  ;;  %v563_v14 = vadd.f32 %v562_v7, %v2832_v15  ;;  %v405_v5 = vpop.f32.mrf.mxu0 }
 0x1d3   :  { %v566_v19 = vpop.f32.mrf.mxu1  ;;  %636 = vst [vmem:[#allocation2 + $0x148] sm:$0xff] %v402_v2  ;;  %v406_v3 = vadd.f32 %v405_v5, %v2820_v9 }
 0x1d4   :  { %638 = vst [vmem:[#allocation2 + $0x158] sm:$0xff] %v563_v14  ;;  %v567_v10 = vadd.f32 %v566_v19, %v2824_v8  ;;  %v407_v16 = vpop.f32.mrf.mxu0 }
 0x1d5   :  { %v568_v11 = vpop.f32.mrf.mxu1  ;;  %639 = vst [vmem:[#allocation2 + $0x160] sm:$0xff] %v406_v3  ;;  %v408_v12 = vadd.f32 %v407_v16, %v2828_v6 }
 0x1d6   :  { %641 = vst [vmem:[#allocation2 + $0x170] sm:$0xff] %v567_v10  ;;  %v569_v4 = vadd.f32 %v568_v11, %v2832_v15  ;;  %v411_v1 = vpop.f32.mrf.mxu0 }
 0x1d7   :  { %v572_v13 = vpop.f32.mrf.mxu1  ;;  %640 = vst [vmem:[#allocation2 + $0x168] sm:$0xff] %v408_v12  ;;  %v412_v7 = vadd.f32 %v411_v1, %v2820_v9 }
 0x1d8   :  { %642 = vst [vmem:[#allocation2 + $0x178] sm:$0xff] %v569_v4  ;;  %v573_v2 = vadd.f32 %v572_v13, %v2824_v8  ;;  %v413_v14 = vpop.f32.mrf.mxu0 }
 0x1d9   :  { %v574_v5 = vpop.f32.mrf.mxu1  ;;  %643 = vst [vmem:[#allocation2 + $0x180] sm:$0xff] %v412_v7  ;;  %v414_v19 = vadd.f32 %v413_v14, %v2828_v6 }
 0x1da   :  { %645 = vst [vmem:[#allocation2 + $0x190] sm:$0xff] %v573_v2  ;;  %v575_v3 = vadd.f32 %v574_v5, %v2832_v15  ;;  %v417_v10 = vpop.f32.mrf.mxu0 }
 0x1db   :  { %v578_v16 = vpop.f32.mrf.mxu1  ;;  %644 = vst [vmem:[#allocation2 + $0x188] sm:$0xff] %v414_v19  ;;  %v418_v11 = vadd.f32 %v417_v10, %v2820_v9 }
 0x1dc   :  { %646 = vst [vmem:[#allocation2 + $0x198] sm:$0xff] %v575_v3  ;;  %v579_v12 = vadd.f32 %v578_v16, %v2824_v8  ;;  %v419_v4 = vpop.f32.mrf.mxu0 }
 0x1dd   :  { %v580_v1 = vpop.f32.mrf.mxu1  ;;  %647 = vst [vmem:[#allocation2 + $0x1a0] sm:$0xff] %v418_v11  ;;  %v420_v13 = vadd.f32 %v419_v4, %v2828_v6 }
 0x1de   :  { %649 = vst [vmem:[#allocation2 + $0x1b0] sm:$0xff] %v579_v12  ;;  %v581_v7 = vadd.f32 %v580_v1, %v2832_v15  ;;  %v423_v2 = vpop.f32.mrf.mxu0 }
 0x1df   :  { %v584_v14 = vpop.f32.mrf.mxu1  ;;  %648 = vst [vmem:[#allocation2 + $0x1a8] sm:$0xff] %v420_v13  ;;  %v424_v5 = vadd.f32 %v423_v2, %v2820_v9 }
 0x1e0   :  { %650 = vst [vmem:[#allocation2 + $0x1b8] sm:$0xff] %v581_v7  ;;  %v585_v19 = vadd.f32 %v584_v14, %v2824_v8  ;;  %v425_v3 = vpop.f32.mrf.mxu0 }
 0x1e1   :  { %v586_v10 = vpop.f32.mrf.mxu1  ;;  %651 = vst [vmem:[#allocation2 + $0x1c0] sm:$0xff] %v424_v5  ;;  %v426_v16 = vadd.f32 %v425_v3, %v2828_v6  ;;  %v2900_v3 = vmov 0.0  }
 0x1e2   :  { %653 = vst [vmem:[#allocation2 + $0x1d0] sm:$0xff] %v585_v19  ;;  %v587_v11 = vadd.f32 %v586_v10, %v2832_v15  ;;  %v429_v12 = vpop.f32.mrf.mxu0  ;;  %v2898_v19 = vmov 0.0   ;;  %v2902_v10 = vmov 0.0  }
 0x1e3   :  { %v590_v4 = vpop.f32.mrf.mxu1  ;;  %652 = vst [vmem:[#allocation2 + $0x1c8] sm:$0xff] %v426_v16  ;;  %v430_v1 = vadd.f32 %v429_v12, %v2820_v9  ;;  %v2904_v16 = vmov 0.0  }
 0x1e4   :  { %654 = vst [vmem:[#allocation2 + $0x1d8] sm:$0xff] %v587_v11  ;;  %v591_v13 = vadd.f32 %v590_v4, %v2824_v8  ;;  %v431_v7 = vpop.f32.mrf.mxu0 }
 0x1e5   :  { %v592_v2 = vpop.f32.mrf.mxu1  ;;  %655 = vst [vmem:[#allocation2 + $0x1e0] sm:$0xff] %v430_v1  ;;  %v432_v14 = vadd.f32 %v431_v7, %v2828_v6 }
 0x1e6   :  { %657 = vst [vmem:[#allocation2 + $0x1f0] sm:$0xff] %v591_v13  ;;  %v593_v5 = vadd.f32 %v592_v2, %v2832_v15 }
 0x1e7   :  { %656 = vst [vmem:[#allocation2 + $0x1e8] sm:$0xff] %v432_v14 }
 0x1e8   :  { %658 = vst [vmem:[#allocation2 + $0x1f8] sm:$0xff] %v593_v5 }
 0x1e9 LB: > { %872 = vmatprep.subr.mxu0 %v2512_v62  ;;  %v3363_v0 = vld [vmem:[#allocation51_spill] sm:$0xff]  ;;  %v3205_v9 = vmov 0.0   ;;  %v3364_v22 = vld [vmem:[#allocation49_spill] sm:$0xff]  ;;  %v3365_v21 = vld [vmem:[#allocation48_spill] sm:$0xff]  ;;  %s1759_s24 = sshll.u32 %s2238_s4, 3  ;;  %s857_s4 = sadd.s32 1, %s2238_s4   ;;  %s2238_s4 = sphi %s2906_s4, %s857_s4   ;;  %v2234_v16 = vphi %v2904_v16, %v3064_v16   ;;  %v2230_v10 = vphi %v2902_v10, %v3061_v10   ;;  %v2226_v3 = vphi %v2900_v3, %v3523_v3   ;;  %v2222_v19 = vphi %v2898_v19, %v1372_v19  }
 0x1ea   : > { %943 = vmatprep.subr.mxu1 %v3363_v0  ;;  %873 = vmatpush1.msra.mxu0 %v2510_v61  ;;  %v3366_v18 = vld [vmem:[#allocation45_spill] sm:$0xff]  ;;  %v3367_v23 = vld [vmem:[#allocation50_spill] sm:$0xff]  ;;  %v3368_v17 = vld [vmem:[#allocation44_spill] sm:$0xff]  ;;  %s863_s16 = sshra.s32 %s1759_s24, 3  ;;  %p854_p3 = scmp.ge.s32.totalorder %s857_s4, 16  }
 0x1eb   : > { %944 = vmatpush1.msra.mxu1 %v2514_v63  ;;  %874 = vmatprep.subr.mxu0 %v2504_v58  ;;  %v3369_v20 = vld [vmem:[#allocation47_spill] sm:$0xff]  ;;  %v3370_v8 = vld [vmem:[#allocation41_spill] sm:$0xff]  ;;  %v3371_v6 = vld [vmem:[#allocation46_spill] sm:$0xff]  ;;  %s1771_s1 = sshll.u32 %s863_s16, 5  ;;  %s2255_s0 = smov (%p854_p3), [#allocation18]  }
 0x1ec   : > { %945 = vmatprep.subr.mxu1 %v2508_v60  ;;  %875 = vmatpush1.msra.mxu0 %v2502_v57  ;;  %v3372_v15 = vld [vmem:[#allocation40_spill] sm:$0xff]  ;;  %v3373_v11 = vld [vmem:[#allocation43_spill] sm:$0xff]  ;;  %v3374_v12 = vld [vmem:[#allocation37_spill] sm:$0xff]  ;;  %s867_s17 = scalar_lea.vmem [#allocation2], %s1771_s1  ;;  %s1713_s21 = sshll.u32 (%p854_p3), %s2255_s0, 4  ;;  %s1714_s21 = int_to_ptr.vmem [resolvable:$true] %s1713_s21 }
 0x1ed   : > { %946 = vmatpush1.msra.mxu1 %v2506_v59  ;;  %876 = vmatprep.subr.mxu0 %v2496_v54  ;;  %v3375_v4 = vld [vmem:[#allocation42_spill] sm:$0xff]  ;;  %v3376_v1 = vld [vmem:[#allocation36_spill] sm:$0xff]  ;;  %v3377_v13 = vld [vmem:[#allocation39_spill] sm:$0xff]  ;;  %s2256_s22 = smov (%p854_p3), [#allocation19]   ;;  %s2146_s27 = scalar_lea.vmem (%p854_p3), %s1714_s21, 128 }
 0x1ee   : > { %947 = vmatprep.subr.mxu1 %v2500_v56  ;;  %877 = vmatpush1.msra.mxu0 %v2494_v53  ;;  %v3378_v7 = vld [vmem:[#allocation33_spill] sm:$0xff]  ;;  %v3379_v2 = vld [vmem:[#allocation38_spill] sm:$0xff]  ;;  %v3380_v14 = vld [vmem:[#allocation32_spill] sm:$0xff]  ;;  %s1723_s25 = sshll.u32 (%p854_p3), %s2256_s22, 4  ;;  %p2147_p4 = scmp.ne.s32.totalorder (%p854_p3), %s1714_s21, %s2146_s27  ;;  %s1724_s25 = int_to_ptr.vmem [resolvable:$true] %s1723_s25 }
 0x1ef   : > { %948 = vmatpush1.msra.mxu1 %v2498_v55  ;;  %878 = vmatprep.subr.mxu0 %v2488_v50  ;;  %v3381_v5 = vld [vmem:[#allocation35_spill] sm:$0xff]  ;;  %v1380_v53 = vld [vmem:[#allocation14 + $0x18] sm:$0xff] (%p854_p3)  ;;  %v1511_v54 = vld [vmem:[#allocation15 + $0xc0] sm:$0xff] (%p854_p3)  ;;  %p2151_p5 = scmp.lt.s32.totalorder (%p854_p3), %s1714_s21, %s1714_s21  ;;  %p2152_p6 = scmp.lt.s32.totalorder (%p854_p3), %s2146_s27, %s2146_s27 }
 0x1f0   : > { %949 = vmatprep.subr.mxu1 %v2492_v52  ;;  %879 = vmatpush1.msra.mxu0 %v2486_v49  ;;  %v1381_v49 = vld [vmem:[#allocation14 + $0x20] sm:$0xff] (%p854_p3)  ;;  %v1512_v50 = vld [vmem:[#allocation15 + $0xc8] sm:$0xff] (%p854_p3)  ;;  %v1395_v55 = vld [vmem:[#allocation14 + $0x90] sm:$0xff] (%p854_p3) }
 0x1f1   : > { %950 = vmatpush1.msra.mxu1 %v2490_v51  ;;  %880 = vmatprep.subr.mxu0 %v2480_v46  ;;  %v1513_v46 = vld [vmem:[#allocation15 + $0xd0] sm:$0xff] (%p854_p3)  ;;  %v1396_v51 = vld [vmem:[#allocation14 + $0x98] sm:$0xff] (%p854_p3)  ;;  %v1496_v52 = vld [vmem:[#allocation15 + $0x48] sm:$0xff] (%p854_p3)  ;;  %p2153_p7 = por (%p854_p3), %p2152_p6, %p2151_p5 }
 0x1f2   : > { %951 = vmatprep.subr.mxu1 %v2484_v48  ;;  %881 = vmatpush1.msra.mxu0 %v2478_v45  ;;  %v1382_v45 = vld [vmem:[#allocation14 + $0x28] sm:$0xff] (%p854_p3)  ;;  %v1497_v48 = vld [vmem:[#allocation15 + $0x50] sm:$0xff] (%p854_p3)  ;;  %v1495_v56 = vld [vmem:[#allocation15 + $0x40] sm:$0xff] (%p854_p3) }
 0x1f3   : > { %952 = vmatpush1.msra.mxu1 %v2482_v47  ;;  %882 = vmatprep.subr.mxu0 %v2472_v42  ;;  %v1514_v42 = vld [vmem:[#allocation15 + $0xd8] sm:$0xff] (%p854_p3)  ;;  %v1397_v47 = vld [vmem:[#allocation14 + $0xa0] sm:$0xff] (%p854_p3)  ;;  %v1379_v57 = vld [vmem:[#allocation14 + $0x10] sm:$0xff] (%p854_p3)  ;;  %p2154_p8 = pnand (%p854_p3), %p2153_p7, %p2147_p4 }
 0x1f4   : > { %953 = vmatprep.subr.mxu1 %v2476_v44  ;;  %883 = vmatpush1.msra.mxu0 %v2470_v41  ;;  %v1383_v41 = vld [vmem:[#allocation14 + $0x30] sm:$0xff] (%p854_p3)  ;;  %v1498_v44 = vld [vmem:[#allocation15 + $0x58] sm:$0xff] (%p854_p3)  ;;  %v1394_v59 = vld [vmem:[#allocation14 + $0x88] sm:$0xff] (%p854_p3) }
 0x1f5   : > { %954 = vmatpush1.msra.mxu1 %v2474_v43  ;;  %884 = vmatprep.subr.mxu0 %v2464_v38  ;;  %v1515_v38 = vld [vmem:[#allocation15 + $0xe0] sm:$0xff] (%p854_p3)  ;;  %v1398_v43 = vld [vmem:[#allocation14 + $0xa8] sm:$0xff] (%p854_p3)  ;;  %v1510_v58 = vld [vmem:[#allocation15 + $0xb8] sm:$0xff] (%p854_p3) }
 0x1f6   : > { %955 = vmatprep.subr.mxu1 %v2468_v40  ;;  %885 = vmatpush1.msra.mxu0 %v2462_v37  ;;  %v1384_v37 = vld [vmem:[#allocation14 + $0x38] sm:$0xff] (%p854_p3)  ;;  %v1499_v40 = vld [vmem:[#allocation15 + $0x60] sm:$0xff] (%p854_p3)  ;;  %v1378_v61 = vld [vmem:[#allocation14 + $0x8] sm:$0xff] (%p854_p3) }
 0x1f7   : > { %956 = vmatpush1.msra.mxu1 %v2466_v39  ;;  %886 = vmatprep.subr.mxu0 %v2456_v34  ;;  %v1400_v34 = vld [vmem:[#allocation14 + $0xb8] sm:$0xff] (%p854_p3)  ;;  %v1399_v39 = vld [vmem:[#allocation14 + $0xb0] sm:$0xff] (%p854_p3)  ;;  %v1393_v63 = vld [vmem:[#allocation14 + $0x80] sm:$0xff] (%p854_p3) }
 0x1f8   : > { %957 = vmatprep.subr.mxu1 %v2460_v36  ;;  %887 = vmatpush1.msra.mxu0 %v2454_v33  ;;  %v1501_v33 = vld [vmem:[#allocation15 + $0x70] sm:$0xff] (%p854_p3)  ;;  %v1500_v36 = vld [vmem:[#allocation15 + $0x68] sm:$0xff] (%p854_p3)  ;;  %v1494_v60 = vld [vmem:[#allocation15 + $0x38] sm:$0xff] (%p854_p3) }
 0x1f9   : > { %936 = vmatprep.mubr.f32.mxu0 %v3205_v9  ;;  %888 = vmatprep.subr.mxu0 %v2448_v30  ;;  %v1502_v30 = vld [vmem:[#allocation15 + $0x78] sm:$0xff] (%p854_p3)  ;;  %v1509_v62 = vld [vmem:[#allocation15 + $0xb0] sm:$0xff] (%p854_p3) }
 0x1fa   : > { %958 = vmatpush1.msra.mxu1 %v2458_v35  ;;  %889 = vmatpush1.msra.mxu0 %v2446_v29  ;;  %v1401_v29 = vld [vmem:[#allocation14 + $0xc0] sm:$0xff] (%p854_p3)  ;;  %v1516_v35 = vld [vmem:[#allocation15 + $0xe8] sm:$0xff] (%p854_p3) }
 0x1fb   : > { %959 = vmatprep.subr.mxu1 %v2452_v32  ;;  %890 = vmatprep.subr.mxu0 %v2440_v26  ;;  %v1376_v26 = vld [vmem:[#allocation6 + $0x8] sm:$0xff] (%p854_p3)  ;;  %v1385_v32 = vld [vmem:[#allocation14 + $0x40] sm:$0xff] (%p854_p3) }
 0x1fc   : > { %960 = vmatpush1.msra.mxu1 %v2450_v31  ;;  %891 = vmatpush1.msra.mxu0 %v2438_v25  ;;  %v1402_v25 = vld [vmem:[#allocation14 + $0xc8] sm:$0xff] (%p854_p3)  ;;  %v1517_v31 = vld [vmem:[#allocation15 + $0xf0] sm:$0xff] (%p854_p3) }
 0x1fd   : > { %961 = vmatprep.subr.mxu1 %v2444_v28  ;;  %892 = vmatprep.subr.mxu0 %v3364_v22  ;;  %v1518_v28 = vld [vmem:[#allocation15 + $0xf8] sm:$0xff] (%p854_p3) }
 0x1fe   : > { %962 = vmatpush1.msra.mxu1 %v2442_v27  ;;  %893 = vmatpush1.msra.mxu0 %v3365_v21  ;;  %v1386_v27 = vld [vmem:[#allocation14 + $0x48] sm:$0xff] (%p854_p3) }
 0x1ff   : > { %963 = vmatprep.subr.mxu1 %v2436_v24  ;;  %894 = vmatprep.subr.mxu0 %v3366_v18  ;;  %v1387_v24 = vld [vmem:[#allocation14 + $0x50] sm:$0xff] (%p854_p3) }
 0x200   : > { %964 = vmatpush1.msra.mxu1 %v3367_v23  ;;  %895 = vmatpush1.msra.mxu0 %v3368_v17 }
 0x201   : > { %965 = vmatprep.subr.mxu1 %v3369_v20  ;;  %896 = vmatprep.subr.mxu0 %v3370_v8  ;;  %v3382_v8 = vld [vmem:[#allocation29_spill] sm:$0xff] }
 0x202   : > { %966 = vmatpush1.msra.mxu1 %v3371_v6  ;;  %897 = vmatpush1.msra.mxu0 %v3372_v15  ;;  %v3383_v6 = vld [vmem:[#allocation34_spill] sm:$0xff]  ;;  %v3384_v15 = vld [vmem:[#allocation28_spill] sm:$0xff] }
 0x203   : > { %967 = vmatprep.subr.mxu1 %v3373_v11  ;;  %898 = vmatprep.subr.mxu0 %v3374_v12  ;;  %v3385_v11 = vld [vmem:[#allocation31_spill] sm:$0xff]  ;;  %v3386_v12 = vld [vmem:[#allocation30_spill] sm:$0xff] }
 0x204   : > { %968 = vmatpush1.msra.mxu1 %v3375_v4  ;;  %899 = vmatpush1.msra.mxu0 %v3376_v1  ;;  %v3387_v4 = vld [vmem:[#allocation113_spill] sm:$0xff]  ;;  %v3388_v1 = vld [vmem:[#allocation115_spill] sm:$0xff] }
 0x205   : > { %969 = vmatprep.subr.mxu1 %v3377_v13  ;;  %900 = vmatprep.subr.mxu0 %v3378_v7  ;;  %v3389_v13 = vld [vmem:[#allocation112_spill] sm:$0xff]  ;;  %v3390_v7 = vld [vmem:[#allocation114_spill] sm:$0xff] }
 0x206   : > { %970 = vmatpush1.msra.mxu1 %v3379_v2  ;;  %901 = vmatpush1.msra.mxu0 %v3380_v14  ;;  %v3391_v2 = vld [vmem:[#allocation109_spill] sm:$0xff]  ;;  %v3392_v14 = vld [vmem:[#allocation111_spill] sm:$0xff] }
 0x207   : > { %971 = vmatprep.subr.mxu1 %v3381_v5  ;;  %902 = vmatprep.subr.mxu0 %v3382_v8  ;;  %v3393_v5 = vld [vmem:[#allocation108_spill] sm:$0xff]  ;;  %v3394_v8 = vld [vmem:[#allocation110_spill] sm:$0xff] }
 0x208   : > { %972 = vmatpush1.msra.mxu1 %v3383_v6  ;;  %903 = vmatpush1.msra.mxu0 %v3384_v15  ;;  %v3395_v6 = vld [vmem:[#allocation105_spill] sm:$0xff]  ;;  %v3396_v15 = vld [vmem:[#allocation107_spill] sm:$0xff] }
 0x209   : > { %973 = vmatprep.subr.mxu1 %v3385_v11  ;;  %937 = vmatmul.mubr.f32.vlgmr.msra.gmra.mxu0 %v2234_v16  ;;  %v3397_v11 = vld [vmem:[#allocation104_spill] sm:$0xff] }
 0x20a   : > { %974 = vmatpush1.msra.mxu1 %v3386_v12  ;;  %1007 = vmatprep.mubr.f32.mxu1 %v3205_v9  ;;  %v3399_v12 = vld [vmem:[#allocation101_spill] sm:$0xff] }
 0x20b   : > { %1063 = vmatprep.subr.mxu0 %v3387_v4  ;;  %1008 = vmatmul.mubr.f32.vlgmr.msra.gmra.mxu1 %v2234_v16  ;;  %v3398_v16 = vld [vmem:[#allocation106_spill] sm:$0xff]  ;;  %v3400_v4 = vld [vmem:[#allocation103_spill] sm:$0xff] }
 0x20c   : > { %1134 = vmatprep.subr.mxu1 %v3388_v1  ;;  %1064 = vmatpush1.msra.mxu0 %v3389_v13  ;;  %v3401_v1 = vld [vmem:[#allocation100_spill] sm:$0xff]  ;;  %v3402_v13 = vld [vmem:[#allocation102_spill] sm:$0xff] }
 0x20d   : > { %1135 = vmatpush1.msra.mxu1 %v3390_v7  ;;  %1065 = vmatprep.subr.mxu0 %v3391_v2  ;;  %v3403_v7 = vld [vmem:[#allocation97_spill] sm:$0xff]  ;;  %v3404_v2 = vld [vmem:[#allocation99_spill] sm:$0xff] }
 0x20e   : > { %1136 = vmatprep.subr.mxu1 %v3392_v14  ;;  %1066 = vmatpush1.msra.mxu0 %v3393_v5  ;;  %v3405_v14 = vld [vmem:[#allocation96_spill] sm:$0xff]  ;;  %v3406_v5 = vld [vmem:[#allocation98_spill] sm:$0xff] }
 0x20f   : > { %1137 = vmatpush1.msra.mxu1 %v3394_v8  ;;  %1067 = vmatprep.subr.mxu0 %v3395_v6  ;;  %v3407_v8 = vld [vmem:[#allocation93_spill] sm:$0xff]  ;;  %v3408_v6 = vld [vmem:[#allocation95_spill] sm:$0xff] }
 0x210   : > { %1138 = vmatprep.subr.mxu1 %v3396_v15  ;;  %1068 = vmatpush1.msra.mxu0 %v3397_v11  ;;  %v3409_v15 = vld [vmem:[#allocation92_spill] sm:$0xff]  ;;  %v3410_v11 = vld [vmem:[#allocation94_spill] sm:$0xff] }
 0x211   : > { %1139 = vmatpush1.msra.mxu1 %v3398_v16  ;;  %1069 = vmatprep.subr.mxu0 %v3399_v12  ;;  %v3411_v16 = vld [vmem:[#allocation89_spill] sm:$0xff]  ;;  %v3412_v12 = vld [vmem:[#allocation91_spill] sm:$0xff] }
 0x212   : > { %1140 = vmatprep.subr.mxu1 %v3400_v4  ;;  %1070 = vmatpush1.msra.mxu0 %v3401_v1  ;;  %v3413_v4 = vld [vmem:[#allocation88_spill] sm:$0xff]  ;;  %v3414_v1 = vld [vmem:[#allocation90_spill] sm:$0xff] }
 0x213   : > { %1141 = vmatpush1.msra.mxu1 %v3402_v13  ;;  %1071 = vmatprep.subr.mxu0 %v3403_v7  ;;  %v3415_v13 = vld [vmem:[#allocation85_spill] sm:$0xff]  ;;  %v3416_v7 = vld [vmem:[#allocation87_spill] sm:$0xff] }
 0x214   : > { %1142 = vmatprep.subr.mxu1 %v3404_v2  ;;  %1072 = vmatpush1.msra.mxu0 %v3405_v14  ;;  %v3417_v2 = vld [vmem:[#allocation84_spill] sm:$0xff]  ;;  %v3418_v14 = vld [vmem:[#allocation86_spill] sm:$0xff] }
 0x215   : > { %1143 = vmatpush1.msra.mxu1 %v3406_v5  ;;  %1073 = vmatprep.subr.mxu0 %v3407_v8  ;;  %v3419_v5 = vld [vmem:[#allocation81_spill] sm:$0xff]  ;;  %v3420_v8 = vld [vmem:[#allocation83_spill] sm:$0xff] }
 0x216   : > { %1144 = vmatprep.subr.mxu1 %v3408_v6  ;;  %1074 = vmatpush1.msra.mxu0 %v3409_v15  ;;  %v3421_v6 = vld [vmem:[#allocation80_spill] sm:$0xff]  ;;  %v3422_v15 = vld [vmem:[#allocation82_spill] sm:$0xff] }
 0x217   : > { %1145 = vmatpush1.msra.mxu1 %v3410_v11  ;;  %1075 = vmatprep.subr.mxu0 %v3411_v16  ;;  %v3423_v11 = vld [vmem:[#allocation77_spill] sm:$0xff]  ;;  %v3424_v16 = vld [vmem:[#allocation79_spill] sm:$0xff] }
 0x218   : > { %1146 = vmatprep.subr.mxu1 %v3412_v12  ;;  %1076 = vmatpush1.msra.mxu0 %v3413_v4  ;;  %v3425_v12 = vld [vmem:[#allocation76_spill] sm:$0xff]  ;;  %v3426_v4 = vld [vmem:[#allocation78_spill] sm:$0xff] }
 0x219   : > { %1147 = vmatpush1.msra.mxu1 %v3414_v1  ;;  %1077 = vmatprep.subr.mxu0 %v3415_v13  ;;  %v3427_v1 = vld [vmem:[#allocation73_spill] sm:$0xff]  ;;  %v3428_v13 = vld [vmem:[#allocation75_spill] sm:$0xff] }
 0x21a   : > { %1148 = vmatprep.subr.mxu1 %v3416_v7  ;;  %1078 = vmatpush1.msra.mxu0 %v3417_v2  ;;  %v3429_v7 = vld [vmem:[#allocation72_spill] sm:$0xff]  ;;  %v3430_v2 = vld [vmem:[#allocation74_spill] sm:$0xff] }
 0x21b   : > { %1149 = vmatpush1.msra.mxu1 %v3418_v14  ;;  %1079 = vmatprep.subr.mxu0 %v3419_v5  ;;  %v3431_v14 = vld [vmem:[#allocation69_spill] sm:$0xff]  ;;  %v3432_v5 = vld [vmem:[#allocation71_spill] sm:$0xff] }
 0x21c   : > { %1150 = vmatprep.subr.mxu1 %v3420_v8  ;;  %1080 = vmatpush1.msra.mxu0 %v3421_v6  ;;  %v3433_v8 = vld [vmem:[#allocation68_spill] sm:$0xff]  ;;  %v3434_v6 = vld [vmem:[#allocation70_spill] sm:$0xff] }
 0x21d   : > { %1151 = vmatpush1.msra.mxu1 %v3422_v15  ;;  %1081 = vmatprep.subr.mxu0 %v3423_v11  ;;  %v3435_v15 = vld [vmem:[#allocation65_spill] sm:$0xff]  ;;  %v3436_v11 = vld [vmem:[#allocation67_spill] sm:$0xff] }
 0x21e   : > { %1152 = vmatprep.subr.mxu1 %v3424_v16  ;;  %1082 = vmatpush1.msra.mxu0 %v3425_v12  ;;  %v3437_v16 = vld [vmem:[#allocation64_spill] sm:$0xff]  ;;  %v3438_v12 = vld [vmem:[#allocation66_spill] sm:$0xff] }
 0x21f   : > { %1153 = vmatpush1.msra.mxu1 %v3426_v4  ;;  %1083 = vmatprep.subr.mxu0 %v3427_v1  ;;  %v3439_v4 = vld [vmem:[#allocation61_spill] sm:$0xff]  ;;  %v3440_v1 = vld [vmem:[#allocation63_spill] sm:$0xff] }
 0x220   : > { %1154 = vmatprep.subr.mxu1 %v3428_v13  ;;  %1084 = vmatpush1.msra.mxu0 %v3429_v7  ;;  %v3441_v13 = vld [vmem:[#allocation60_spill] sm:$0xff]  ;;  %v3442_v7 = vld [vmem:[#allocation62_spill] sm:$0xff] }
 0x221   : > { %1155 = vmatpush1.msra.mxu1 %v3430_v2  ;;  %1085 = vmatprep.subr.mxu0 %v3431_v14  ;;  %v3443_v2 = vld [vmem:[#allocation57_spill] sm:$0xff]  ;;  %v3444_v14 = vld [vmem:[#allocation59_spill] sm:$0xff] }
 0x222   : > { %1156 = vmatprep.subr.mxu1 %v3432_v5  ;;  %1086 = vmatpush1.msra.mxu0 %v3433_v8  ;;  %v3445_v5 = vld [vmem:[#allocation56_spill] sm:$0xff]  ;;  %v3446_v8 = vld [vmem:[#allocation58_spill] sm:$0xff] }
 0x223   : > { %1157 = vmatpush1.msra.mxu1 %v3434_v6  ;;  %1087 = vmatprep.subr.mxu0 %v3435_v15  ;;  %v3447_v6 = vld [vmem:[#allocation53_spill] sm:$0xff]  ;;  %v3448_v15 = vld [vmem:[#allocation55_spill] sm:$0xff] }
 0x224   : > { %1158 = vmatprep.subr.mxu1 %v3436_v11  ;;  %1088 = vmatpush1.msra.mxu0 %v3437_v16  ;;  %v3449_v11 = vld [vmem:[#allocation52_spill] sm:$0xff]  ;;  %v3450_v16 = vld [vmem:[#allocation54_spill] sm:$0xff] }
 0x225   : > { %1159 = vmatpush1.msra.mxu1 %v3438_v12  ;;  %1089 = vmatprep.subr.mxu0 %v3439_v4  ;;  %v3451_v12 = vld [vmem:[#allocation177_spill] sm:$0xff]  ;;  %v3452_v4 = vld [vmem:[#allocation179_spill] sm:$0xff] }
 0x226   : > { %1160 = vmatprep.subr.mxu1 %v3440_v1  ;;  %1090 = vmatpush1.msra.mxu0 %v3441_v13  ;;  %v868_v1 = vld [vmem:[%s867_s17] sm:$0xff] }
 0x227   : > { %1161 = vmatpush1.msra.mxu1 %v3442_v7  ;;  %1091 = vmatprep.subr.mxu0 %v3443_v2  ;;  %v869_v7 = vld [vmem:[%s867_s17 + $0x8] sm:$0xff] }
 0x228   : > { %1162 = vmatprep.subr.mxu1 %v3444_v14  ;;  %1092 = vmatpush1.msra.mxu0 %v3445_v5 }
 0x229   : > { %1163 = vmatpush1.msra.mxu1 %v3446_v8  ;;  %1093 = vmatprep.subr.mxu0 %v3447_v6 }
 0x22a   : > { %1164 = vmatprep.subr.mxu1 %v3448_v15  ;;  %1094 = vmatpush1.msra.mxu0 %v3449_v11  ;;  %v871_v11 = vld [vmem:[%s867_s17 + $0x18] sm:$0xff] }
 0x22b   : > { %1165 = vmatpush1.msra.mxu1 %v3450_v16  ;;  %1127 = vmatprep.mubr.f32.mxu0 %v3205_v9 }
 0x22c   : > { %1198 = vmatprep.mubr.f32.mxu1 %v3205_v9  ;;  %1205 = vmatprep.subr.mxu0 %v3451_v12  ;;  %v870_v12 = vld [vmem:[%s867_s17 + $0x10] sm:$0xff] }
 0x22d   : > { %1276 = vmatprep.subr.mxu1 %v3452_v4 }
 0x2c9   : > { %v938_v13 = vpop.f32.mrf.mxu0 }
 0x2ca   : > { %v1014_v2 = vadd.f32 %v938_v13, %v868_v1 }
 0x2cb   : > { %v940_v14 = vpop.f32.mrf.mxu0  ;;  %v1009_v15 = vpop.f32.mrf.mxu1 }
 0x2cc   : > { %v1762_v5 = vmul.f32 -1.442695, %v1014_v2  ;;  %v1015_v8 = vadd.f32 %v940_v14, %v869_v7  ;;  %v1016_v4 = vadd.f32 %v1009_v15, %v870_v12  ;;  %v3456_v15 = vld [vmem:[#allocation175_spill] sm:$0xff]  ;;  %v3458_v12 = vld [vmem:[#allocation174_spill] sm:$0xff] }
 0x2cd   : > { %v1011_v16 = vpop.f32.mrf.mxu1 }
 0x2ce   : > { %1934 = vpow2.f32 %v1762_v5  ;;  %v1763_v6 = vmul.f32 -1.442695, %v1015_v8  ;;  %v1017_v9 = vadd.f32 %v1011_v16, %v871_v11  ;;  %v3457_v11 = vld [vmem:[#allocation172_spill] sm:$0xff] }
 0x2d0   : > { %1936 = vpow2.f32 %v1763_v6  ;;  %v1764_v0 = vmul.f32 -1.442695, %v1017_v9 }
 0x2d1   : > { %1938 = vtanh.f32 %v1016_v4  ;;  %v3459_v4 = vld [vmem:[#allocation169_spill] sm:$0xff] }
 0x2d2   : > { %1940 = vpow2.f32 %v1764_v0  ;;  %v3453_v0 = vld [vmem:[#allocation176_spill] sm:$0xff] }
 0x2db   : > { %v1935_v17 = vpop.eup %1934 }
 0x2dc   : > { %v1021_v18 = vadd.f32 1.0, %v1935_v17 }
 0x2dd   : > { %v1937_v20 = vpop.eup %1936 }
 0x2de   : > { %1942 = vrcp.f32 %v1021_v18  ;;  %v1027_v1 = vadd.f32 1.0, %v1937_v20  ;;  %v1939_v13 = vpop.eup %1938  ;;  %v3454_v18 = vld [vmem:[#allocation178_spill] sm:$0xff]  ;;  %v3455_v20 = vld [vmem:[#allocation173_spill] sm:$0xff] }
 0x2df   : > { %v1941_v7 = vpop.eup %1940 }
 0x2e0   : > { %1944 = vrcp.f32 %v1027_v1  ;;  %v1034_v5 = vadd.f32 1.0, %v1941_v7  ;;  %v3460_v1 = vld [vmem:[#allocation171_spill] sm:$0xff]  ;;  %v3462_v7 = vld [vmem:[#allocation170_spill] sm:$0xff] }
 0x2e2   : > { %1946 = vrcp.f32 %v1034_v5  ;;  %v3465_v5 = vld [vmem:[#allocation164_spill] sm:$0xff] }
 0x2eb   : > { %v1943_v2 = vpop.eup %1942 }
 0x2ec   : > { %v1038_v6 = vmul.f32 %v1943_v2, %v1939_v13  ;;  %v3461_v13 = vld [vmem:[#allocation168_spill] sm:$0xff]  ;;  %v3463_v2 = vld [vmem:[#allocation165_spill] sm:$0xff] }
 0x2ed   : > { %v1945_v14 = vpop.eup %1944 }
 0x2ee   : > { %v1037_v8 = vmul.f32 %v2230_v10, %v1945_v14  ;;  %v3464_v14 = vld [vmem:[#allocation167_spill] sm:$0xff] }
 0x2ef   : > { %v1947_v17 = vpop.eup %1946 }
 0x2f0   : > { %v3061_v10 = vadd.f32 %v1038_v6, %v1037_v8   ;;  %v3466_v8 = vld [vmem:[#allocation166_spill] sm:$0xff]  ;;  %v3467_v6 = vld [vmem:[#allocation161_spill] sm:$0xff] }
 0x2f2   : > { %1948 = vtanh.f32 %v3061_v10  ;;  %v1377_v10 = vld [vmem:[#allocation14] sm:$0xff] (%p854_p3) }
 0x2ff   : > { %v1949_v9 = vpop.eup %1948 }
 0x300   : > { %v3064_v16 = vmul.f32 %v1949_v9, %v1947_v17   ;;  %v3468_v17 = vld [vmem:[#allocation163_spill] sm:$0xff]  ;;  %v3469_v9 = vld [vmem:[#allocation160_spill] sm:$0xff] }
 0x302   : > { %1128 = vmatmul.mubr.f32.vlgmr.msra.gmra.mxu0 %v3064_v16  ;;  %1199 = vmatmul.mubr.f32.vlgmr.msra.gmra.mxu1 %v3064_v16  ;;  %v1388_v16 = vld [vmem:[#allocation14 + $0x58] sm:$0xff] (%p854_p3) }
 0x303   : > { %1206 = vmatpush1.msra.mxu0 %v3453_v0  ;;  %1277 = vmatpush1.msra.mxu1 %v3454_v18  ;;  %v3470_v0 = vld [vmem:[#allocation162_spill] sm:$0xff]  ;;  %v3471_v18 = vld [vmem:[#allocation157_spill] sm:$0xff] }
 0x304   : > { %1207 = vmatprep.subr.mxu0 %v3455_v20  ;;  %1278 = vmatprep.subr.mxu1 %v3456_v15  ;;  %v3472_v20 = vld [vmem:[#allocation159_spill] sm:$0xff]  ;;  %v3473_v15 = vld [vmem:[#allocation156_spill] sm:$0xff] }
 0x305   : > { %1208 = vmatpush1.msra.mxu0 %v3457_v11  ;;  %1279 = vmatpush1.msra.mxu1 %v3458_v12  ;;  %v3474_v11 = vld [vmem:[#allocation158_spill] sm:$0xff]  ;;  %v3475_v12 = vld [vmem:[#allocation153_spill] sm:$0xff] }
 0x306   : > { %1209 = vmatprep.subr.mxu0 %v3459_v4  ;;  %1280 = vmatprep.subr.mxu1 %v3460_v1  ;;  %v3476_v4 = vld [vmem:[#allocation155_spill] sm:$0xff]  ;;  %v3477_v1 = vld [vmem:[#allocation152_spill] sm:$0xff] }
 0x307   : > { %1210 = vmatpush1.msra.mxu0 %v3461_v13  ;;  %1281 = vmatpush1.msra.mxu1 %v3462_v7  ;;  %v3478_v13 = vld [vmem:[#allocation154_spill] sm:$0xff]  ;;  %v3479_v7 = vld [vmem:[#allocation149_spill] sm:$0xff] }
 0x308   : > { %1211 = vmatprep.subr.mxu0 %v3463_v2  ;;  %1282 = vmatprep.subr.mxu1 %v3464_v14  ;;  %v3480_v2 = vld [vmem:[#allocation151_spill] sm:$0xff]  ;;  %v3481_v14 = vld [vmem:[#allocation148_spill] sm:$0xff] }
 0x309   : > { %1212 = vmatpush1.msra.mxu0 %v3465_v5  ;;  %1283 = vmatpush1.msra.mxu1 %v3466_v8  ;;  %v3482_v5 = vld [vmem:[#allocation150_spill] sm:$0xff]  ;;  %v3483_v8 = vld [vmem:[#allocation145_spill] sm:$0xff] }
 0x30a   : > { %1213 = vmatprep.subr.mxu0 %v3467_v6  ;;  %1284 = vmatprep.subr.mxu1 %v3468_v17  ;;  %v3484_v6 = vld [vmem:[#allocation147_spill] sm:$0xff]  ;;  %v3485_v17 = vld [vmem:[#allocation144_spill] sm:$0xff] }
 0x30b   : > { %1214 = vmatpush1.msra.mxu0 %v3469_v9  ;;  %1285 = vmatpush1.msra.mxu1 %v3470_v0  ;;  %v3486_v9 = vld [vmem:[#allocation146_spill] sm:$0xff]  ;;  %v3487_v0 = vld [vmem:[#allocation141_spill] sm:$0xff] }
 0x30c   : > { %1215 = vmatprep.subr.mxu0 %v3471_v18  ;;  %1286 = vmatprep.subr.mxu1 %v3472_v20  ;;  %v3488_v18 = vld [vmem:[#allocation143_spill] sm:$0xff]  ;;  %v3489_v20 = vld [vmem:[#allocation140_spill] sm:$0xff] }
 0x30d   : > { %1216 = vmatpush1.msra.mxu0 %v3473_v15  ;;  %1287 = vmatpush1.msra.mxu1 %v3474_v11  ;;  %v3490_v15 = vld [vmem:[#allocation142_spill] sm:$0xff]  ;;  %v3491_v11 = vld [vmem:[#allocation137_spill] sm:$0xff] }
 0x30e   : > { %1217 = vmatprep.subr.mxu0 %v3475_v12  ;;  %1288 = vmatprep.subr.mxu1 %v3476_v4  ;;  %v3492_v12 = vld [vmem:[#allocation139_spill] sm:$0xff]  ;;  %v3493_v4 = vld [vmem:[#allocation136_spill] sm:$0xff] }
 0x30f   : > { %1218 = vmatpush1.msra.mxu0 %v3477_v1  ;;  %1289 = vmatpush1.msra.mxu1 %v3478_v13  ;;  %v3494_v1 = vld [vmem:[#allocation138_spill] sm:$0xff]  ;;  %v3495_v13 = vld [vmem:[#allocation133_spill] sm:$0xff] }
 0x310   : > { %1219 = vmatprep.subr.mxu0 %v3479_v7  ;;  %1290 = vmatprep.subr.mxu1 %v3480_v2  ;;  %v3496_v7 = vld [vmem:[#allocation135_spill] sm:$0xff]  ;;  %v3497_v2 = vld [vmem:[#allocation132_spill] sm:$0xff] }
 0x311   : > { %1220 = vmatpush1.msra.mxu0 %v3481_v14  ;;  %1291 = vmatpush1.msra.mxu1 %v3482_v5  ;;  %v3498_v14 = vld [vmem:[#allocation134_spill] sm:$0xff]  ;;  %v3499_v5 = vld [vmem:[#allocation129_spill] sm:$0xff] }
 0x312   : > { %1221 = vmatprep.subr.mxu0 %v3483_v8  ;;  %1292 = vmatprep.subr.mxu1 %v3484_v6  ;;  %v3500_v8 = vld [vmem:[#allocation131_spill] sm:$0xff]  ;;  %v3501_v6 = vld [vmem:[#allocation128_spill] sm:$0xff] }
 0x313   : > { %1222 = vmatpush1.msra.mxu0 %v3485_v17  ;;  %1293 = vmatpush1.msra.mxu1 %v3486_v9  ;;  %v3502_v17 = vld [vmem:[#allocation130_spill] sm:$0xff]  ;;  %v3503_v9 = vld [vmem:[#allocation125_spill] sm:$0xff] }
 0x314   : > { %1223 = vmatprep.subr.mxu0 %v3487_v0  ;;  %1294 = vmatprep.subr.mxu1 %v3488_v18  ;;  %v3504_v0 = vld [vmem:[#allocation127_spill] sm:$0xff]  ;;  %v3505_v18 = vld [vmem:[#allocation124_spill] sm:$0xff] }
 0x315   : > { %1224 = vmatpush1.msra.mxu0 %v3489_v20  ;;  %1295 = vmatpush1.msra.mxu1 %v3490_v15  ;;  %v3506_v20 = vld [vmem:[#allocation126_spill] sm:$0xff]  ;;  %v3507_v15 = vld [vmem:[#allocation121_spill] sm:$0xff] }
 0x316   : > { %1225 = vmatprep.subr.mxu0 %v3491_v11  ;;  %1296 = vmatprep.subr.mxu1 %v3492_v12  ;;  %v3508_v11 = vld [vmem:[#allocation123_spill] sm:$0xff]  ;;  %v3509_v12 = vld [vmem:[#allocation120_spill] sm:$0xff] }
 0x317   : > { %1226 = vmatpush1.msra.mxu0 %v3493_v4  ;;  %1297 = vmatpush1.msra.mxu1 %v3494_v1  ;;  %v3510_v4 = vld [vmem:[#allocation122_spill] sm:$0xff]  ;;  %v3511_v1 = vld [vmem:[#allocation117_spill] sm:$0xff] }
 0x318   : > { %1227 = vmatprep.subr.mxu0 %v3495_v13  ;;  %1298 = vmatprep.subr.mxu1 %v3496_v7  ;;  %v3512_v13 = vld [vmem:[#allocation119_spill] sm:$0xff]  ;;  %v3513_v7 = vld [vmem:[#allocation116_spill] sm:$0xff] }
 0x319   : > { %1228 = vmatpush1.msra.mxu0 %v3497_v2  ;;  %1299 = vmatpush1.msra.mxu1 %v3498_v14  ;;  %v3514_v2 = vmov 0.0   ;;  %v3515_v14 = vld [vmem:[#allocation118_spill] sm:$0xff] }
 0x31a   : > { %1229 = vmatprep.subr.mxu0 %v3499_v5  ;;  %1300 = vmatprep.subr.mxu1 %v3500_v8  ;;  %v3516_v8 = vld [vmem:[#allocation181_spill] sm:$0xff] }
 0x31b   : > { %1230 = vmatpush1.msra.mxu0 %v3501_v6  ;;  %1301 = vmatpush1.msra.mxu1 %v3502_v17  ;;  %v3517_v6 = vsub.s32 0, %v3516_v8  ;;  %v3518_v17 = vld [vmem:[#allocation180_spill] sm:$0xff]  ;;  %v3520_v22 = vsub.s32 3, %v3516_v8 }
 0x31c   : > { %1231 = vmatprep.subr.mxu0 %v3503_v9  ;;  %1302 = vmatprep.subr.mxu1 %v3504_v0  ;;  %v3519_v0 = vsub.s32 1, %v3516_v8 }
 0x31d   : > { %1232 = vmatpush1.msra.mxu0 %v3505_v18  ;;  %1303 = vmatpush1.msra.mxu1 %v3506_v20  ;;  %v1046_v9 = vrot.slane %v3518_v17, %v3517_v6  ;;  %v1058_v6 = vrot.slane %v3518_v17, %v3520_v22 }
 0x31e   : > { %1233 = vmatprep.subr.mxu0 %v3507_v15  ;;  %1304 = vmatprep.subr.mxu1 %v3508_v11  ;;  %v1050_v18 = vrot.slane %v3518_v17, %v3519_v0 }
 0x31f   : > { %1234 = vmatpush1.msra.mxu0 %v3509_v12  ;;  %1305 = vmatpush1.msra.mxu1 %v3510_v4 }
 0x320   : > { %1235 = vmatprep.subr.mxu0 %v3511_v1  ;;  %1306 = vmatprep.subr.mxu1 %v3512_v13 }
 0x321   : > { %1236 = vmatpush1.msra.mxu0 %v3513_v7  ;;  %1269 = vmatprep.mubr.f32.mxu0 %v3514_v2 }
 0x322   : > { %1307 = vmatpush1.msra.mxu1 %v3515_v14  ;;  %1340 = vmatprep.mubr.f32.mxu1 %v3514_v2 }
 0x323   : > { %1270 = vmatmul.mubr.f32.vlgmr.msra.gmra.mxu0 %v2226_v3  ;;  %1341 = vmatmul.mubr.f32.vlgmr.msra.gmra.mxu1 %v2226_v3 }
 0x324   :  { %1480 = vmatprep.mubr.f32.mxu0 (%p854_p3), %v1376_v26  ;;  %1807 = vmatprep.subr.mxu1 (%p854_p3), %v1518_v28  ;;  %v1617_v26 = vld [vmem:[#allocation17 + $0xa8] sm:$0xff] (%p854_p3)  ;;  %v1507_v28 = vld [vmem:[#allocation15 + $0xa0] sm:$0xff] (%p854_p3) }
 0x325   :  { %1808 = vmatpush3.msra.mxu1 (%p854_p3), %v1502_v30  ;;  %v1491_v30 = vld [vmem:[#allocation15 + $0x20] sm:$0xff] (%p854_p3) }
 0x326   :  { %1809 = vmatprep.subr.mxu1 (%p854_p3), %v1517_v31  ;;  %v1600_v31 = vld [vmem:[#allocation17 + $0x20] sm:$0xff] (%p854_p3) }
 0x327   :  { %1810 = vmatpush3.msra.mxu1 (%p854_p3), %v1501_v33  ;;  %v1615_v33 = vld [vmem:[#allocation17 + $0x98] sm:$0xff] (%p854_p3) }
 0x328   :  { %1811 = vmatprep.subr.mxu1 (%p854_p3), %v1516_v35  ;;  %v1599_v35 = vld [vmem:[#allocation17 + $0x18] sm:$0xff] (%p854_p3) }
 0x329   :  { %1812 = vmatpush3.msra.mxu1 (%p854_p3), %v1500_v36  ;;  %v1505_v36 = vld [vmem:[#allocation15 + $0x90] sm:$0xff] (%p854_p3) }
 0x32a   :  { %1813 = vmatprep.subr.mxu1 (%p854_p3), %v1515_v38  ;;  %v1489_v38 = vld [vmem:[#allocation15 + $0x10] sm:$0xff] (%p854_p3) }
 0x32b   :  { %1814 = vmatpush3.msra.mxu1 (%p854_p3), %v1499_v40  ;;  %v1504_v40 = vld [vmem:[#allocation15 + $0x88] sm:$0xff] (%p854_p3) }
 0x32c   :  { %1815 = vmatprep.subr.mxu1 (%p854_p3), %v1514_v42  ;;  %v1488_v42 = vld [vmem:[#allocation15 + $0x8] sm:$0xff] (%p854_p3) }
 0x32d   :  { %1816 = vmatpush3.msra.mxu1 (%p854_p3), %v1498_v44  ;;  %v1503_v44 = vld [vmem:[#allocation15 + $0x80] sm:$0xff] (%p854_p3) }
 0x32e   :  { %1817 = vmatprep.subr.mxu1 (%p854_p3), %v1513_v46  ;;  %v1487_v46 = vld [vmem:[#allocation15] sm:$0xff] (%p854_p3) }
 0x32f   :  { %1818 = vmatpush3.msra.mxu1 (%p854_p3), %v1497_v48 }
 0x330   :  { %1819 = vmatprep.subr.mxu1 (%p854_p3), %v1512_v50  ;;  %v1768_v50 = vld [vmem:[%s3189_s9] ss:$0 sm:$0xff] (%p854_p3) }
 0x331   :  { %1820 = vmatpush3.msra.mxu1 (%p854_p3), %v1496_v52 }
 0x332   :  { %1821 = vmatprep.subr.mxu1 (%p854_p3), %v1511_v54 }
 0x333   :  { %1822 = vmatpush3.msra.mxu1 (%p854_p3), %v1495_v56 }
 0x334   :  { %1823 = vmatprep.subr.mxu1 (%p854_p3), %v1510_v58  ;;  %v1769_v58 = vld [vmem:[%s3191_s11] ss:$0 sm:$0xff] (%p854_p3) }
 0x335   :  { %1824 = vmatpush3.msra.mxu1 (%p854_p3), %v1494_v60 }
 0x336   :  { %1825 = vmatprep.subr.mxu1 (%p854_p3), %v1509_v62 }
 0x3c2   : > { %v1129_v5 = vpop.f32.mrf.mxu0  ;;  %v1200_v11 = vpop.f32.mrf.mxu1 }
 0x3c3   : > { %v1130_v15 = vadd.f32 %v1129_v5, %v1046_v9  ;;  %v3521_v5 = vsub.s32 2, %v3516_v8 }
 0x3c4   : > { %v1131_v20 = vpop.f32.mrf.mxu0  ;;  %v1202_v7 = vpop.f32.mrf.mxu1 }
 0x3c5   : > { %v1132_v4 = vadd.f32 %v1131_v20, %v1050_v18  ;;  %v1203_v0 = vadd.f32 %v1202_v7, %v1058_v6  ;;  %v1054_v9 = vrot.slane %v3518_v17, %v3521_v5  ;;  %v1508_v17 = vld [vmem:[#allocation15 + $0xa8] sm:$0xff] (%p854_p3) }
 0x3c7   : > { %v1201_v20 = vadd.f32 %v1200_v11, %v1054_v9  ;;  %v1392_v9 = vld [vmem:[#allocation14 + $0x78] sm:$0xff] (%p854_p3) }
 0x3e3   : > { %v1271_v12 = vpop.f32.mrf.mxu0  ;;  %v1342_v3 = vpop.f32.mrf.mxu1 }
 0x3e4   : > { %v1347_v1 = vadd.f32 %v1271_v12, %v1130_v15 }
 0x3e5   : > { %v1273_v13 = vpop.f32.mrf.mxu0  ;;  %v1344_v23 = vpop.f32.mrf.mxu1 }
 0x3e6   : > { %v1765_v2 = vmul.f32 -1.442695, %v1347_v1  ;;  %v1348_v14 = vadd.f32 %v1273_v13, %v1132_v4  ;;  %v1350_v18 = vadd.f32 %v1344_v23, %v1203_v0  ;;  %v1349_v1 = vadd.f32 %v1342_v3, %v1201_v20  ;;  %v1391_v20 = vld [vmem:[#allocation14 + $0x70] sm:$0xff] (%p854_p3) }
 0x3e8   : > { %1950 = vpow2.f32 %v1765_v2  ;;  %v1766_v21 = vmul.f32 -1.442695, %v1348_v14  ;;  %v1767_v15 = vmul.f32 -1.442695, %v1350_v18  ;;  %v1407_v18 = vld [vmem:[#allocation14 + $0xf0] sm:$0xff] (%p854_p3) }
 0x3ea   : > { %1952 = vpow2.f32 %v1766_v21 }
 0x3eb   : > { %1954 = vpow2.f32 %v1767_v15  ;;  %v1406_v15 = vld [vmem:[#allocation14 + $0xe8] sm:$0xff] (%p854_p3) }
 0x3f5   : > { %v1951_v12 = vpop.eup %1950 }
 0x3f6   : > { %v1354_v4 = vadd.f32 1.0, %v1951_v12  ;;  %v1390_v12 = vld [vmem:[#allocation14 + $0x68] sm:$0xff] (%p854_p3) }
 0x3f7   : > { %v1953_v13 = vpop.eup %1952 }
 0x3f8   : > { %1956 = vrcp.f32 %v1354_v4  ;;  %v1360_v2 = vadd.f32 1.0, %v1953_v13  ;;  %v1955_v22 = vpop.eup %1954  ;;  %v1389_v4 = vld [vmem:[#allocation14 + $0x60] sm:$0xff] (%p854_p3)  ;;  %v1404_v13 = vld [vmem:[#allocation14 + $0xd8] sm:$0xff] (%p854_p3) }
 0x3f9   : > { %1958 = vtanh.f32 %v1349_v1  ;;  %v1367_v6 = vadd.f32 1.0, %v1955_v22  ;;  %v1405_v1 = vld [vmem:[#allocation14 + $0xe0] sm:$0xff] (%p854_p3)  ;;  %v1627_v22 = vld [vmem:[#allocation17 + $0xf8] sm:$0xff] (%p854_p3) }
 0x3fa   : > { %1960 = vrcp.f32 %v1360_v2  ;;  %v1403_v2 = vld [vmem:[#allocation14 + $0xd0] sm:$0xff] (%p854_p3) }
 0x3fb   : > { %1962 = vrcp.f32 %v1367_v6  ;;  %v1610_v6 = vld [vmem:[#allocation17 + $0x70] sm:$0xff] (%p854_p3) }
 0x405   : > { %v1957_v21 = vpop.eup %1956 }
 0x406   : > { %v1959_v14 = vpop.eup %1958 }
 0x407   : > { %v1961_v7 = vpop.eup %1960  ;;  %v1371_v8 = vmul.f32 %v1959_v14, %v1957_v21  ;;  %v1611_v21 = vld [vmem:[#allocation17 + $0x78] sm:$0xff] (%p854_p3)  ;;  %v1492_v14 = vld [vmem:[#allocation15 + $0x28] sm:$0xff] (%p854_p3) }
 0x408   : > { %v1370_v5 = vmul.f32 %v2222_v19, %v1961_v7  ;;  %v1963_v23 = vpop.eup %1962  ;;  %v1626_v7 = vld [vmem:[#allocation17 + $0xf0] sm:$0xff] (%p854_p3) }
 0x40a   : > { %v1372_v19 = vadd.f32 %v1371_v8, %v1370_v5   ;;  %v1408_v8 = vld [vmem:[#allocation14 + $0xf8] sm:$0xff] (%p854_p3)  ;;  %v1625_v5 = vld [vmem:[#allocation17 + $0xe8] sm:$0xff] (%p854_p3) }
 0x40b   :  { %1772 = vmatprep.subr.mxu0 (%p854_p3), %v1408_v8  ;;  %v1608_v8 = vld [vmem:[#allocation17 + $0x60] sm:$0xff] (%p854_p3) }
 0x40c   : > { %1964 = vtanh.f32 %v1372_v19  ;;  %1773 = vmatpush3.msra.mxu0 (%p854_p3), %v1392_v9  ;;  %v1493_v19 = vld [vmem:[#allocation15 + $0x30] sm:$0xff] (%p854_p3)  ;;  %v1623_v9 = vld [vmem:[#allocation17 + $0xd8] sm:$0xff] (%p854_p3) }
 0x40d   :  { %1774 = vmatprep.subr.mxu0 (%p854_p3), %v1407_v18  ;;  %1826 = vmatpush3.msra.mxu1 (%p854_p3), %v1493_v19  ;;  %v1607_v18 = vld [vmem:[#allocation17 + $0x58] sm:$0xff] (%p854_p3) }
 0x40e   :  { %1775 = vmatpush3.msra.mxu0 (%p854_p3), %v1391_v20  ;;  %1827 = vmatprep.subr.mxu1 (%p854_p3), %v1508_v17  ;;  %v1622_v20 = vld [vmem:[#allocation17 + $0xd0] sm:$0xff] (%p854_p3) }
 0x40f   :  { %1776 = vmatprep.subr.mxu0 (%p854_p3), %v1406_v15  ;;  %1828 = vmatpush3.msra.mxu1 (%p854_p3), %v1492_v14  ;;  %v1606_v15 = vld [vmem:[#allocation17 + $0x50] sm:$0xff] (%p854_p3) }
 0x410   :  { %1777 = vmatpush3.msra.mxu0 (%p854_p3), %v1390_v12  ;;  %v1621_v12 = vld [vmem:[#allocation17 + $0xc8] sm:$0xff] (%p854_p3)  ;;  %1829 = vmatprep.subr.mxu1 (%p854_p3), %v1507_v28 }
 0x411   :  { %1778 = vmatprep.subr.mxu0 (%p854_p3), %v1405_v1  ;;  %v1605_v1 = vld [vmem:[#allocation17 + $0x48] sm:$0xff] (%p854_p3)  ;;  %1830 = vmatpush3.msra.mxu1 (%p854_p3), %v1491_v30 }
 0x412   :  { %1779 = vmatpush3.msra.mxu0 (%p854_p3), %v1389_v4  ;;  %v1620_v4 = vld [vmem:[#allocation17 + $0xc0] sm:$0xff] (%p854_p3) }
 0x413   :  { %1780 = vmatprep.subr.mxu0 (%p854_p3), %v1404_v13  ;;  %v1604_v13 = vld [vmem:[#allocation17 + $0x40] sm:$0xff] (%p854_p3) }
 0x414   :  { %1781 = vmatpush3.msra.mxu0 (%p854_p3), %v1388_v16  ;;  %v1619_v16 = vld [vmem:[#allocation17 + $0xb8] sm:$0xff] (%p854_p3) }
 0x415   :  { %1782 = vmatprep.subr.mxu0 (%p854_p3), %v1403_v2  ;;  %v1603_v2 = vld [vmem:[#allocation17 + $0x38] sm:$0xff] (%p854_p3) }
 0x416   :  { %1783 = vmatpush3.msra.mxu0 (%p854_p3), %v1387_v24  ;;  %v1618_v24 = vld [vmem:[#allocation17 + $0xb0] sm:$0xff] (%p854_p3) }
 0x417   :  { %1784 = vmatprep.subr.mxu0 (%p854_p3), %v1402_v25  ;;  %v1602_v25 = vld [vmem:[#allocation17 + $0x30] sm:$0xff] (%p854_p3) }
 0x418   :  { %1785 = vmatpush3.msra.mxu0 (%p854_p3), %v1386_v27  ;;  %v1601_v27 = vld [vmem:[#allocation17 + $0x28] sm:$0xff] (%p854_p3) }
 0x419   : > { %v1965_v11 = vpop.eup %1964  ;;  %856 = sbr.rel (!%p854_p3) target bundleno = 489 (0x1e9), region = 128  ;;  %1786 = vmatprep.subr.mxu0 (%p854_p3), %v1401_v29  ;;  %v1616_v29 = vld [vmem:[#allocation17 + $0xa0] sm:$0xff] (%p854_p3) }
 0x41a   : > { %v3147_v3 = vmul.f32 %v1965_v11, %v1963_v23   ;;  %1787 = vmatpush3.msra.mxu0 (%p854_p3), %v1385_v32  ;;  %v1609_v23 = vld [vmem:[#allocation17 + $0x68] sm:$0xff] (%p854_p3)  ;;  %v1624_v11 = vld [vmem:[#allocation17 + $0xe0] sm:$0xff] (%p854_p3)  ;;  %v1506_v32 = vld [vmem:[#allocation15 + $0x98] sm:$0xff] (%p854_p3) }
 0x41b   :  { %1788 = vmatprep.subr.mxu0 (%p854_p3), %v1400_v34  ;;  %1831 = vmatprep.subr.mxu1 (%p854_p3), %v1506_v32  ;;  %v1490_v34 = vld [vmem:[#allocation15 + $0x18] sm:$0xff] (%p854_p3) }
 0x41c   : > { %v3522_v0 = vmov %v3147_v3  ;;  %1789 = vmatpush3.msra.mxu0 (%p854_p3), %v1384_v37  ;;  %1832 = vmatpush3.msra.mxu1 (%p854_p3), %v1490_v34  ;;  %v1614_v37 = vld [vmem:[#allocation17 + $0x90] sm:$0xff] (%p854_p3) }
 0x41d   : > { %v3523_v3 = vmov %v3522_v0  ;;  %1790 = vmatprep.subr.mxu0 (%p854_p3), %v1399_v39  ;;  %1833 = vmatprep.subr.mxu1 (%p854_p3), %v1505_v36  ;;  %v1598_v39 = vld [vmem:[#allocation17 + $0x10] sm:$0xff] (%p854_p3) }
 0x41e   :  { %1791 = vmatpush3.msra.mxu0 %v1383_v41  ;;  %v1375_v3 = vld [vmem:[#allocation6] sm:$0xff]  ;;  %v1613_v41 = vld [vmem:[#allocation17 + $0x88] sm:$0xff]  ;;  %1834 = vmatpush3.msra.mxu1 %v1489_v38 }
 0x41f   :  { %1792 = vmatprep.subr.mxu0 %v1398_v43  ;;  %v1597_v43 = vld [vmem:[#allocation17 + $0x8] sm:$0xff]  ;;  %1835 = vmatprep.subr.mxu1 %v1504_v40 }
 0x420   :  { %1793 = vmatpush3.msra.mxu0 %v1382_v45  ;;  %v1612_v45 = vld [vmem:[#allocation17 + $0x80] sm:$0xff]  ;;  %1836 = vmatpush3.msra.mxu1 %v1488_v42 }
 0x421   :  { %1794 = vmatprep.subr.mxu0 %v1397_v47  ;;  %1837 = vmatprep.subr.mxu1 %v1503_v44  ;;  %v1596_v47 = vld [vmem:[#allocation17] sm:$0xff] }
 0x422   :  { %1795 = vmatpush3.msra.mxu0 %v1381_v49  ;;  %1838 = vmatpush3.msra.mxu1 %v1487_v46 }
 0x423   :  { %1796 = vmatprep.subr.mxu0 %v1396_v51 }
 0x424   :  { %1797 = vmatpush3.msra.mxu0 %v1380_v53 }
 0x425   :  { %1798 = vmatprep.subr.mxu0 %v1395_v55 }
 0x426   :  { %1799 = vmatpush3.msra.mxu0 %v1379_v57 }
 0x427   :  { %1800 = vmatprep.subr.mxu0 %v1394_v59  ;;  %v1770_v59 = vld [vmem:[%s3193_s13] ss:$0 sm:$0xff] }
 0x428   :  { %1801 = vmatpush3.msra.mxu0 %v1378_v61 }
 0x429   :  { %1802 = vmatprep.subr.mxu0 %v1393_v63 }
 0x42a   :  { %1803 = vmatpush3.msra.mxu0 %v1377_v10 }
 0x42b   :  { %1481 = vmatmul.mubr.f32.vlgmr.msra.gmra.mxu0 %v1375_v3  ;;  %1842 = vmatprep.subr.mxu0 %v1627_v22 }
 0x42c   :  { %1843 = vmatpush3.msra.mxu0 %v1611_v21 }
 0x42d   :  { %1844 = vmatprep.subr.mxu0 %v1626_v7 }
 0x42e   :  { %1845 = vmatpush3.msra.mxu0 %v1610_v6 }
 0x42f   :  { %1846 = vmatprep.subr.mxu0 %v1625_v5 }
 0x430   :  { %1847 = vmatpush3.msra.mxu0 %v1609_v23 }
 0x431   :  { %1848 = vmatprep.subr.mxu0 %v1624_v11 }
 0x432   :  { %1849 = vmatpush3.msra.mxu0 %v1608_v8 }
 0x433   :  { %1850 = vmatprep.subr.mxu0 %v1623_v9 }
 0x434   :  { %1851 = vmatpush3.msra.mxu0 %v1607_v18 }
 0x435   :  { %1852 = vmatprep.subr.mxu0 %v1622_v20 }
 0x436   :  { %1853 = vmatpush3.msra.mxu0 %v1606_v15 }
 0x437   :  { %1854 = vmatprep.subr.mxu0 %v1621_v12 }
 0x438   :  { %1855 = vmatpush3.msra.mxu0 %v1605_v1 }
 0x439   :  { %1856 = vmatprep.subr.mxu0 %v1620_v4 }
 0x43a   :  { %1857 = vmatpush3.msra.mxu0 %v1604_v13 }
 0x43b   :  { %1858 = vmatprep.subr.mxu0 %v1619_v16 }
 0x43c   :  { %1859 = vmatpush3.msra.mxu0 %v1603_v2 }
 0x43d   :  { %1860 = vmatprep.subr.mxu0 %v1618_v24 }
 0x43e   :  { %1861 = vmatpush3.msra.mxu0 %v1602_v25 }
 0x43f   :  { %1862 = vmatprep.subr.mxu0 %v1617_v26 }
 0x440   :  { %1863 = vmatpush3.msra.mxu0 %v1601_v27 }
 0x441   :  { %1864 = vmatprep.subr.mxu0 %v1616_v29 }
 0x442   :  { %1865 = vmatpush3.msra.mxu0 %v1600_v31 }
 0x443   :  { %1866 = vmatprep.subr.mxu0 %v1615_v33 }
 0x444   :  { %1867 = vmatpush3.msra.mxu0 %v1599_v35 }
 0x445   :  { %1868 = vmatprep.subr.mxu0 %v1614_v37 }
 0x446   :  { %1869 = vmatpush3.msra.mxu0 %v1598_v39 }
 0x447   :  { %1870 = vmatprep.subr.mxu0 %v1613_v41 }
 0x448   :  { %1871 = vmatpush3.msra.mxu0 %v1597_v43 }
 0x449   :  { %1872 = vmatprep.subr.mxu0 %v1612_v45 }
 0x44a   :  { %1873 = vmatpush3.msra.mxu0 %v1596_v47 }
 0x4eb   :  { %v1804_v48 = vpop.f32.mrf.mxu0 }
 0x4ed   :  { %v1805_v49 = vpop.f32.mrf.mxu0 }
 0x4ee   :  { %v1806_v51 = vadd.f32 %v1805_v49, %v1804_v48 }
 0x4f0   :  { %v1483_v52 = vadd.f32 %v1806_v51, %v1768_v50 }
 0x4f2   :  { %v1486_v53 = vmax.f32 %v1483_v52, 0.0 }
 0x4f4   :  { %1590 = vmatprep.mubr.f32.mxu1 %v1486_v53  ;;  %1699 = vmatprep.mubr.f32.mxu0 %v1486_v53 }
 0x4f5   :  { %1591 = vmatmul.mubr.f32.vlgmr.msra.gmra.mxu1 %v3522_v0  ;;  %1700 = vmatmul.mubr.f32.vlgmr.msra.gmra.mxu0 %v3522_v0 }
 0x5b5   :  { %v1839_v54 = vpop.f32.mrf.mxu1  ;;  %v1874_v55 = vpop.f32.mrf.mxu0 }
 0x5b7   :  { %v1840_v56 = vpop.f32.mrf.mxu1  ;;  %v1875_v57 = vpop.f32.mrf.mxu0 }
 0x5b8   :  { %v1841_v60 = vadd.f32 %v1840_v56, %v1839_v54  ;;  %v1876_v61 = vadd.f32 %v1875_v57, %v1874_v55 }
 0x5ba   :  { %v1593_v62 = vadd.f32 %v1841_v60, %v1769_v58  ;;  %v1702_v0 = vadd.f32 %v1876_v61, %v1770_v59 }
 0x5bc   :  { %1705 = vst [vmem:[#allocation18] sm:$0xff] %v1593_v62  ;;  %1706 = vst [vmem:[#allocation19] sm:$0xff] %v1702_v0 }
 0x5bd   :  { %2157 = shalt.err (!%p2154_p8)
}
 0x5be   :  { %1716 = dma.vmem_to_hbm [thread:$0]  %s1714_s21, 128, %s3194_s14, [#allocation5]  }
 0x5bf   :  { %s2166_s13 = scalar_lea.vmem %s1724_s25, 128  ;;  %p2171_p10 = scmp.lt.s32.totalorder %s1724_s25, %s1724_s25 }
 0x5c0   :  { %p2167_p9 = scmp.ne.s32.totalorder %s1724_s25, %s2166_s13  ;;  %p2172_p11 = scmp.lt.s32.totalorder %s2166_s13, %s2166_s13 }
 0x5c2   :  { %p2173_p12 = por %p2172_p11, %p2171_p10 }
 0x5c4   :  { %p2174_p13 = pnand %p2173_p12, %p2167_p9 }
 0x5c6   :  { %2177 = shalt.err (!%p2174_p13)
}
 0x5c7   :  { %1726 = dma.vmem_to_hbm [thread:$0]  %s1724_s25, 128, %s3195_s15, [#allocation20]  }
 0x5c8   :  { %2216 = dma.done.wait [#allocation5], 128  }
 0x5c9   :  { %2217 = vsyncadd [#allocation5], 4294967168 }
 0x5ca   :  { %2218 = dma.done.wait [#allocation20], 128  }
 0x5cb   :  { %2219 = vsyncadd [#allocation20], 4294967168 }
 0x5cc   :  { %1733 = vsyncpa [#allocation4], 1 }
 0x5cd   :  { %1734 = vsyncpa [#allocation7], 1 }
 0x5ce   :  { %1735 = vsyncpa [#allocation10], 1 }
 0x5cf   :  { %1736 = vsyncpa [#allocation13], 1 }
 0x5d0   :  { %1737 = vsyncpa [#allocation16], 1 }
 0x5d1   :  { %1738 = vsyncpa [#allocation5], 1 }
 0x5d2   :  { %1739 = vsyncpa [#allocation20], 1 }

</bundles_post_ra>
